<compile_context>
chip_gen: v7x
topology: tpu7x:2x2x1
jax: 0.10.0
libtpu: 0.0.40
codegen_flags: <defaults>
</compile_context>

<pallas_src>
import jax
import jax.numpy as jnp
from jax import lax
from jax.experimental import pallas as pl
from jax.experimental.pallas import tpu as pltpu


BATCH_TILE = 128  # lane-dense batch tile at scale (per-TensorCore block)


def _round_up(x, m):
    return ((x + m - 1) // m) * m


# -----------------------------------------------------------------------------
# Pallas kernel: serial LSTM recurrence + per-step Linear->Sigmoid head.
#   xw_ref    : (T, Bt, 4*Hp)  precomputed x @ W_ih + (b_ih + b_hh), gate-padded
#   w_hh_ref  : (Hp, 4*Hp)     recurrent weights, gate-padded, zero pad rows
#   w_lin_ref : (1, Hp)        head weights (zero in pad lanes)
#   b_lin_ref : (1,)           head bias (SMEM scalar)
#   out_ref   : (T, Bt)        sigmoid(Linear(h_t)) — single bulk store
# -----------------------------------------------------------------------------
def lstm_disc_kernel(xw_ref, w_hh_ref, w_lin_ref, b_lin_ref, out_ref):
    T, Bt, _ = xw_ref.shape
    Hp = w_hh_ref.shape[0]

    w_lin = w_lin_ref[...]          # (1, Hp) — hoisted head-weight load
    b_lin = b_lin_ref[0]            # scalar, rides the SMEM/scalar path

    h = jnp.zeros((Bt, Hp), jnp.float32)
    c = jnp.zeros((Bt, Hp), jnp.float32)
    logits = []                     # T per-step (1, Bt) rows, kept in vregs

    # T is small and static -> fully unroll so the scheduler sees across steps.
    for t in range(T):
        # Serial critical path: h @ W_hh on the MXU (W_hh read from its VMEM
        # ref each step, not hoisted into vregs).
        gates = xw_ref[t] + jnp.dot(h, w_hh_ref[...],
                                    preferred_element_type=jnp.float32)  # (Bt, 4Hp)
        # PyTorch gate order i, f, g, o; each gate sits in its own 128-lane
        # block so these slices are zero-cost lane-aligned views.
        # Elementwise/transcendental math stays f32 (no bf16 VPU/EUP on v5e).
        i_g = jax.nn.sigmoid(gates[:, 0 * Hp:1 * Hp])
        f_g = jax.nn.sigmoid(gates[:, 1 * Hp:2 * Hp])
        g_g = jnp.tanh(gates[:, 2 * Hp:3 * Hp])
        o_g = jax.nn.sigmoid(gates[:, 3 * Hp:4 * Hp])
        c = f_g * c + i_g * g_g
        h = o_g * jnp.tanh(c)
        # Per-step head on the live h: tiny (1,Hp)@(Hp,Bt) contraction on the
        # MXU (which has slack).  Replaces the old (T, B, Hp) VMEM scratch
        # round trip; only T (1, Bt) rows stay live.
        logits.append(lax.dot_general(w_lin, h, (((1,), (1,)), ((), ())),
                                      preferred_element_type=jnp.float32))

    lg = jnp.concatenate(logits, axis=0) + b_lin            # (T, Bt)
    # One bulk store with the batch dimension on the lane axis.
    out_ref[...] = jax.nn.sigmoid(lg).astype(out_ref.dtype)


def lstm_discriminator_forward(data, params):
    """data: (B, T, F) float32 -> (B, T, 1) float32 (matches the PyTorch module)."""
    B, T, F = data.shape
    Hp = params["w_hh_p"].shape[0]
    G = params["w_hh_p"].shape[1]          # 4 * Hp

    # Batch tiling: >= 8 to fill f32 sublanes; 128-wide lane-dense tiles at scale.
    if B >= BATCH_TILE:
        Bt = BATCH_TILE
    else:
        Bt = _round_up(max(B, 1), 8)
    Bp = _round_up(B, Bt)
    nb = Bp // Bt

    data_p = jnp.pad(data, ((0, Bp - B), (0, 0), (0, 0)))

    # Hoisted input projection fused with the batch-first -> time-major
    # transpose (one well-shaped matmul, off the serial critical path).
    xw = jnp.einsum("btf,fg->tbg", data_p, params["w_ih_p"]) + params["b_p"]  # (T, Bp, G)

    out_tm = pl.pallas_call(
        lstm_disc_kernel,
        out_shape=jax.ShapeDtypeStruct((T, Bp), jnp.float32),
        grid_spec=pltpu.PrefetchScalarGridSpec(
            num_scalar_prefetch=0,
            grid=(nb,),
            in_specs=[
                # xw streamed per batch tile (auto double-buffered DMA).
                pl.BlockSpec((T, Bt, G), lambda b: (0, b, 0)),
                # W_hh / W_lin: constant index_map -> stay VMEM-resident.
                pl.BlockSpec((Hp, G), lambda b: (0, 0)),
                pl.BlockSpec((1, Hp), lambda b: (0, 0)),
                # Scalar head bias rides the SMEM / scalar path.
                pl.BlockSpec(memory_space=pltpu.SMEM),
            ],
            out_specs=pl.BlockSpec((T, Bt), lambda b: (0, b)),
        ),
        compiler_params=pltpu.CompilerParams(
            dimension_semantics=("parallel",),      # batch tiles are independent
            vmem_limit_bytes=32 * 1024 * 1024,
        ),
    )(xw, params["w_hh_p"], params["w_lin_p"], params["b_lin_p"])

    return jnp.transpose(out_tm[:, :B], (1, 0))[..., None]    # (B, T, 1)


# -----------------------------------------------------------------------------
# Pure-JAX reference (unpadded H=100, lax.scan) — validates that the padded
# kernel is a numerical no-op relative to the original module math.
# -----------------------------------------------------------------------------
def ref_forward(data, raw):
    B, T, F = data.shape
    H = raw["w_hh"].shape[1]
    w_ih_t = raw["w_ih"].T                       # (F, 4H)
    w_hh_t = raw["w_hh"].T                       # (H, 4H)
    b = (raw["b_ih"] + raw["b_hh"]).reshape(1, 4 * H)
    w_lin = raw["w_lin"]                         # (1, H)
    b_lin = raw["b_lin"].reshape(1, 1)

    def step(carry, x_t):
        h, c = carry
        gates = x_t @ w_ih_t + h @ w_hh_t + b
        i_g = jax.nn.sigmoid(gates[:, 0 * H:1 * H])
        f_g = jax.nn.sigmoid(gates[:, 1 * H:2 * H])
        g_g = jnp.tanh(gates[:, 2 * H:3 * H])
        o_g = jax.nn.sigmoid(gates[:, 3 * H:4 * H])
        c_new = f_g * c + i_g * g_g
        h_new = o_g * jnp.tanh(c_new)
        y = jax.nn.sigmoid(jnp.sum(h_new * w_lin, axis=-1, keepdims=True) + b_lin)
        return (h_new, c_new), y

    x_tm = jnp.transpose(data, (1, 0, 2))
    init = (jnp.zeros((B, H), jnp.float32), jnp.zeros((B, H), jnp.float32))
    _, ys = lax.scan(step, init, x_tm)           # (T, B, 1)
    return jnp.transpose(ys, (1, 0, 2))


# -----------------------------------------------------------------------------
# Parameter init mirroring nn.LSTM / nn.Linear defaults, plus the padded
# kernel-friendly layout (H -> 128, each gate in its own 128-lane block).
# -----------------------------------------------------------------------------
def init_params(key, nb_features, hidden_size, padded_hidden=128):
    H, F, Hp = hidden_size, nb_features, padded_hidden
    ks = jax.random.split(key, 6)
    bound = 1.0 / jnp.sqrt(jnp.float32(H))
    u = lambda k, shape: jax.random.uniform(k, shape, jnp.float32, -bound, bound)
    w_ih = u(ks[0], (4 * H, F))      # nn.LSTM weight_ih_l0 (gate order i,f,g,o)
    w_hh = u(ks[1], (4 * H, H))      # nn.LSTM weight_hh_l0
    b_ih = u(ks[2], (4 * H,))        # nn.LSTM bias_ih_l0
    b_hh = u(ks[3], (4 * H,))        # nn.LSTM bias_hh_l0
    w_lin = u(ks[4], (1, H))         # nn.Linear weight
    b_lin = u(ks[5], (1,))           # nn.Linear bias
    raw = dict(w_ih=w_ih, w_hh=w_hh, b_ih=b_ih, b_hh=b_hh,
               w_lin=w_lin, b_lin=b_lin)

    def pad_gate_cols(w_t):
        # w_t: (K, 4H) with gate g in cols [g*H, (g+1)*H). Return (K, 4*Hp)
        # with each gate zero-padded into its own 128-lane block.
        blocks = [jnp.pad(w_t[:, g * H:(g + 1) * H], ((0, 0), (0, Hp - H)))
                  for g in range(4)]
        return jnp.concatenate(blocks, axis=1)

    w_ih_p = pad_gate_cols(w_ih.T)                                  # (F, 4*Hp)
    w_hh_p = pad_gate_cols(jnp.pad(w_hh.T, ((0, Hp - H), (0, 0))))  # (Hp, 4*Hp)
    b_p = pad_gate_cols((b_ih + b_hh).reshape(1, 4 * H))            # (1, 4*Hp)
    w_lin_p = jnp.pad(w_lin, ((0, 0), (0, Hp - H)))                 # (1, Hp)
    b_lin_p = b_lin                                                 # (1,) -> SMEM
    # Zero pads => pad lanes give i=f=o=0.5, g=0 -> c=h=0 there, and the
    # zero-padded w_lin keeps the head output identical to the unpadded model.
    padded = dict(w_ih_p=w_ih_p, w_hh_p=w_hh_p, b_p=b_p,
                  w_lin_p=w_lin_p, b_lin_p=b_lin_p)
    return raw, padded


if __name__ == "__main__":
    B, T, F, H = 2, 8, 4, 100   # nb_features=4, hidden_size=100 (as in module)
    key = jax.random.PRNGKey(0)
    k_data, k_param = jax.random.split(key)
    data = jax.random.normal(k_data, (B, T, F), jnp.float32)
    raw, params = init_params(k_param, F, H)

    out = jax.block_until_ready(lstm_discriminator_forward(data, params))
    ref = jax.block_until_ready(ref_forward(data, raw))

    assert out.shape == (B, T, 1), out.shape
    # Tolerance covers MXU f32-pass / accumulation-order differences between
    # the Mosaic kernel (recurrence + head dots) and the XLA reference.
    assert jnp.allclose(out, ref, atol=1e-3, rtol=1e-3), \
        float(jnp.max(jnp.abs(out - ref)))
    print("KERNEL_OK")
</pallas_src>

<mosaic_0001>
module attributes {stable_mosaic.version = 11 : i64} {
  func.func @lstm_disc_kernel(%arg0: i32, %arg1: memref<8x8x512xf32, #tpu.memory_space<vmem>>, %arg2: memref<128x512xf32, #tpu.memory_space<vmem>>, %arg3: memref<1x128xf32, #tpu.memory_space<vmem>>, %arg4: memref<1xf32, #tpu.memory_space<smem>>, %arg5: memref<8x8xf32, #tpu.memory_space<vmem>>) attributes {dimension_semantics = [#tpu.dimension_semantics<parallel>], iteration_bounds = array<i64: 1>, scalar_prefetch = 0 : i64, scratch_operands = 0 : i64, tpu.core_type = #tpu.core_type<tc>, window_params = [{transform_indices = @transform_0, window_bounds = array<i64: 8, 8, 512>}, {pipeline_mode = #tpu.pipeline_mode<synchronous>, transform_indices = @transform_1, window_bounds = array<i64: 128, 512>}, {pipeline_mode = #tpu.pipeline_mode<synchronous>, transform_indices = @transform_2, window_bounds = array<i64: 1, 128>}, {transform_indices = @transform_3, window_bounds = array<i64: 1>}, {transform_indices = @transform_4, window_bounds = array<i64: 8, 8>}]} {
    %c0 = arith.constant 0 : index
    %c0_0 = arith.constant 0 : index
    %0 = vector.load %arg3[%c0, %c0_0] : memref<1x128xf32, #tpu.memory_space<vmem>>, vector<1x128xf32>
    %c0_1 = arith.constant 0 : index
    %1 = memref.load %arg4[%c0_1] : memref<1xf32, #tpu.memory_space<smem>>
    %cst = arith.constant 0.000000e+00 : f32
    %2 = vector.broadcast %cst : f32 to vector<8x128xf32>
    %cst_2 = arith.constant 0.000000e+00 : f32
    %3 = vector.broadcast %cst_2 : f32 to vector<8x128xf32>
    %c0_3 = arith.constant 0 : index
    %c0_4 = arith.constant 0 : index
    %c0_5 = arith.constant 0 : index
    %4 = vector.load %arg1[%c0_3, %c0_4, %c0_5] : memref<8x8x512xf32, #tpu.memory_space<vmem>>, vector<1x8x512xf32>
    %5 = vector.shape_cast %4 : vector<1x8x512xf32> to vector<8x512xf32>
    %c0_6 = arith.constant 0 : index
    %c0_7 = arith.constant 0 : index
    %6 = vector.load %arg2[%c0_6, %c0_7] : memref<128x512xf32, #tpu.memory_space<vmem>>, vector<128x512xf32>
    %cst_8 = arith.constant dense<0.000000e+00> : vector<8x512xf32>
    %7 = tpu.matmul %2, %6, %cst_8 {dimension_numbers = #tpu.dot_dimension_numbers<[1], [0], [0], [1], [0, 0, 1, 1], [], []>} : vector<8x128xf32>, vector<128x512xf32>, vector<8x512xf32> -> vector<8x512xf32>
    %8 = arith.addf %5, %7 : vector<8x512xf32>
    %9 = vector.extract_strided_slice %8 {offsets = [0, 0], sizes = [8, 128], strides = [1, 1]} : vector<8x512xf32> to vector<8x128xf32>
    %10 = arith.negf %9 : vector<8x128xf32>
    %11 = math.exp %10 : vector<8x128xf32>
    %cst_9 = arith.constant 1.000000e+00 : f32
    %12 = vector.broadcast %cst_9 : f32 to vector<8x128xf32>
    %13 = arith.addf %12, %11 : vector<8x128xf32>
    %14 = arith.divf %12, %13 : vector<8x128xf32>
    %15 = vector.extract_strided_slice %8 {offsets = [0, 128], sizes = [8, 128], strides = [1, 1]} : vector<8x512xf32> to vector<8x128xf32>
    %16 = arith.negf %15 : vector<8x128xf32>
    %17 = math.exp %16 : vector<8x128xf32>
    %cst_10 = arith.constant 1.000000e+00 : f32
    %18 = vector.broadcast %cst_10 : f32 to vector<8x128xf32>
    %19 = arith.addf %18, %17 : vector<8x128xf32>
    %20 = arith.divf %18, %19 : vector<8x128xf32>
    %21 = vector.extract_strided_slice %8 {offsets = [0, 256], sizes = [8, 128], strides = [1, 1]} : vector<8x512xf32> to vector<8x128xf32>
    %22 = math.tanh %21 : vector<8x128xf32>
    %23 = vector.extract_strided_slice %8 {offsets = [0, 384], sizes = [8, 128], strides = [1, 1]} : vector<8x512xf32> to vector<8x128xf32>
    %24 = arith.negf %23 : vector<8x128xf32>
    %25 = math.exp %24 : vector<8x128xf32>
    %cst_11 = arith.constant 1.000000e+00 : f32
    %26 = vector.broadcast %cst_11 : f32 to vector<8x128xf32>
    %27 = arith.addf %26, %25 : vector<8x128xf32>
    %28 = arith.divf %26, %27 : vector<8x128xf32>
    %29 = arith.mulf %20, %3 : vector<8x128xf32>
    %30 = arith.mulf %14, %22 : vector<8x128xf32>
    %31 = arith.addf %29, %30 : vector<8x128xf32>
    %32 = math.tanh %31 : vector<8x128xf32>
    %33 = arith.mulf %28, %32 : vector<8x128xf32>
    %cst_12 = arith.constant dense<0.000000e+00> : vector<1x8xf32>
    %34 = tpu.matmul %0, %33, %cst_12 {dimension_numbers = #tpu.dot_dimension_numbers<[1], [1], [0], [0], [0, 0, 1, 0], [], []>} : vector<1x128xf32>, vector<8x128xf32>, vector<1x8xf32> -> vector<1x8xf32>
    %c1 = arith.constant 1 : index
    %c0_13 = arith.constant 0 : index
    %c0_14 = arith.constant 0 : index
    %35 = vector.load %arg1[%c1, %c0_13, %c0_14] : memref<8x8x512xf32, #tpu.memory_space<vmem>>, vector<1x8x512xf32>
    %36 = vector.shape_cast %35 : vector<1x8x512xf32> to vector<8x512xf32>
    %c0_15 = arith.constant 0 : index
    %c0_16 = arith.constant 0 : index
    %37 = vector.load %arg2[%c0_15, %c0_16] : memref<128x512xf32, #tpu.memory_space<vmem>>, vector<128x512xf32>
    %cst_17 = arith.constant dense<0.000000e+00> : vector<8x512xf32>
    %38 = tpu.matmul %33, %37, %cst_17 {dimension_numbers = #tpu.dot_dimension_numbers<[1], [0], [0], [1], [0, 0, 1, 1], [], []>} : vector<8x128xf32>, vector<128x512xf32>, vector<8x512xf32> -> vector<8x512xf32>
    %39 = arith.addf %36, %38 : vector<8x512xf32>
    %40 = vector.extract_strided_slice %39 {offsets = [0, 0], sizes = [8, 128], strides = [1, 1]} : vector<8x512xf32> to vector<8x128xf32>
    %41 = arith.negf %40 : vector<8x128xf32>
    %42 = math.exp %41 : vector<8x128xf32>
    %cst_18 = arith.constant 1.000000e+00 : f32
    %43 = vector.broadcast %cst_18 : f32 to vector<8x128xf32>
    %44 = arith.addf %43, %42 : vector<8x128xf32>
    %45 = arith.divf %43, %44 : vector<8x128xf32>
    %46 = vector.extract_strided_slice %39 {offsets = [0, 128], sizes = [8, 128], strides = [1, 1]} : vector<8x512xf32> to vector<8x128xf32>
    %47 = arith.negf %46 : vector<8x128xf32>
    %48 = math.exp %47 : vector<8x128xf32>
    %cst_19 = arith.constant 1.000000e+00 : f32
    %49 = vector.broadcast %cst_19 : f32 to vector<8x128xf32>
    %50 = arith.addf %49, %48 : vector<8x128xf32>
    %51 = arith.divf %49, %50 : vector<8x128xf32>
    %52 = vector.extract_strided_slice %39 {offsets = [0, 256], sizes = [8, 128], strides = [1, 1]} : vector<8x512xf32> to vector<8x128xf32>
    %53 = math.tanh %52 : vector<8x128xf32>
    %54 = vector.extract_strided_slice %39 {offsets = [0, 384], sizes = [8, 128], strides = [1, 1]} : vector<8x512xf32> to vector<8x128xf32>
    %55 = arith.negf %54 : vector<8x128xf32>
    %56 = math.exp %55 : vector<8x128xf32>
    %cst_20 = arith.constant 1.000000e+00 : f32
    %57 = vector.broadcast %cst_20 : f32 to vector<8x128xf32>
    %58 = arith.addf %57, %56 : vector<8x128xf32>
    %59 = arith.divf %57, %58 : vector<8x128xf32>
    %60 = arith.mulf %51, %31 : vector<8x128xf32>
    %61 = arith.mulf %45, %53 : vector<8x128xf32>
    %62 = arith.addf %60, %61 : vector<8x128xf32>
    %63 = math.tanh %62 : vector<8x128xf32>
    %64 = arith.mulf %59, %63 : vector<8x128xf32>
    %cst_21 = arith.constant dense<0.000000e+00> : vector<1x8xf32>
    %65 = tpu.matmul %0, %64, %cst_21 {dimension_numbers = #tpu.dot_dimension_numbers<[1], [1], [0], [0], [0, 0, 1, 0], [], []>} : vector<1x128xf32>, vector<8x128xf32>, vector<1x8xf32> -> vector<1x8xf32>
    %c2 = arith.constant 2 : index
    %c0_22 = arith.constant 0 : index
    %c0_23 = arith.constant 0 : index
    %66 = vector.load %arg1[%c2, %c0_22, %c0_23] : memref<8x8x512xf32, #tpu.memory_space<vmem>>, vector<1x8x512xf32>
    %67 = vector.shape_cast %66 : vector<1x8x512xf32> to vector<8x512xf32>
    %c0_24 = arith.constant 0 : index
    %c0_25 = arith.constant 0 : index
    %68 = vector.load %arg2[%c0_24, %c0_25] : memref<128x512xf32, #tpu.memory_space<vmem>>, vector<128x512xf32>
    %cst_26 = arith.constant dense<0.000000e+00> : vector<8x512xf32>
    %69 = tpu.matmul %64, %68, %cst_26 {dimension_numbers = #tpu.dot_dimension_numbers<[1], [0], [0], [1], [0, 0, 1, 1], [], []>} : vector<8x128xf32>, vector<128x512xf32>, vector<8x512xf32> -> vector<8x512xf32>
    %70 = arith.addf %67, %69 : vector<8x512xf32>
    %71 = vector.extract_strided_slice %70 {offsets = [0, 0], sizes = [8, 128], strides = [1, 1]} : vector<8x512xf32> to vector<8x128xf32>
    %72 = arith.negf %71 : vector<8x128xf32>
    %73 = math.exp %72 : vector<8x128xf32>
    %cst_27 = arith.constant 1.000000e+00 : f32
    %74 = vector.broadcast %cst_27 : f32 to vector<8x128xf32>
    %75 = arith.addf %74, %73 : vector<8x128xf32>
    %76 = arith.divf %74, %75 : vector<8x128xf32>
    %77 = vector.extract_strided_slice %70 {offsets = [0, 128], sizes = [8, 128], strides = [1, 1]} : vector<8x512xf32> to vector<8x128xf32>
    %78 = arith.negf %77 : vector<8x128xf32>
    %79 = math.exp %78 : vector<8x128xf32>
    %cst_28 = arith.constant 1.000000e+00 : f32
    %80 = vector.broadcast %cst_28 : f32 to vector<8x128xf32>
    %81 = arith.addf %80, %79 : vector<8x128xf32>
    %82 = arith.divf %80, %81 : vector<8x128xf32>
    %83 = vector.extract_strided_slice %70 {offsets = [0, 256], sizes = [8, 128], strides = [1, 1]} : vector<8x512xf32> to vector<8x128xf32>
    %84 = math.tanh %83 : vector<8x128xf32>
    %85 = vector.extract_strided_slice %70 {offsets = [0, 384], sizes = [8, 128], strides = [1, 1]} : vector<8x512xf32> to vector<8x128xf32>
    %86 = arith.negf %85 : vector<8x128xf32>
    %87 = math.exp %86 : vector<8x128xf32>
    %cst_29 = arith.constant 1.000000e+00 : f32
    %88 = vector.broadcast %cst_29 : f32 to vector<8x128xf32>
    %89 = arith.addf %88, %87 : vector<8x128xf32>
    %90 = arith.divf %88, %89 : vector<8x128xf32>
    %91 = arith.mulf %82, %62 : vector<8x128xf32>
    %92 = arith.mulf %76, %84 : vector<8x128xf32>
    %93 = arith.addf %91, %92 : vector<8x128xf32>
    %94 = math.tanh %93 : vector<8x128xf32>
    %95 = arith.mulf %90, %94 : vector<8x128xf32>
    %cst_30 = arith.constant dense<0.000000e+00> : vector<1x8xf32>
    %96 = tpu.matmul %0, %95, %cst_30 {dimension_numbers = #tpu.dot_dimension_numbers<[1], [1], [0], [0], [0, 0, 1, 0], [], []>} : vector<1x128xf32>, vector<8x128xf32>, vector<1x8xf32> -> vector<1x8xf32>
    %c3 = arith.constant 3 : index
    %c0_31 = arith.constant 0 : index
    %c0_32 = arith.constant 0 : index
    %97 = vector.load %arg1[%c3, %c0_31, %c0_32] : memref<8x8x512xf32, #tpu.memory_space<vmem>>, vector<1x8x512xf32>
    %98 = vector.shape_cast %97 : vector<1x8x512xf32> to vector<8x512xf32>
    %c0_33 = arith.constant 0 : index
    %c0_34 = arith.constant 0 : index
    %99 = vector.load %arg2[%c0_33, %c0_34] : memref<128x512xf32, #tpu.memory_space<vmem>>, vector<128x512xf32>
    %cst_35 = arith.constant dense<0.000000e+00> : vector<8x512xf32>
    %100 = tpu.matmul %95, %99, %cst_35 {dimension_numbers = #tpu.dot_dimension_numbers<[1], [0], [0], [1], [0, 0, 1, 1], [], []>} : vector<8x128xf32>, vector<128x512xf32>, vector<8x512xf32> -> vector<8x512xf32>
    %101 = arith.addf %98, %100 : vector<8x512xf32>
    %102 = vector.extract_strided_slice %101 {offsets = [0, 0], sizes = [8, 128], strides = [1, 1]} : vector<8x512xf32> to vector<8x128xf32>
    %103 = arith.negf %102 : vector<8x128xf32>
    %104 = math.exp %103 : vector<8x128xf32>
    %cst_36 = arith.constant 1.000000e+00 : f32
    %105 = vector.broadcast %cst_36 : f32 to vector<8x128xf32>
    %106 = arith.addf %105, %104 : vector<8x128xf32>
    %107 = arith.divf %105, %106 : vector<8x128xf32>
    %108 = vector.extract_strided_slice %101 {offsets = [0, 128], sizes = [8, 128], strides = [1, 1]} : vector<8x512xf32> to vector<8x128xf32>
    %109 = arith.negf %108 : vector<8x128xf32>
    %110 = math.exp %109 : vector<8x128xf32>
    %cst_37 = arith.constant 1.000000e+00 : f32
    %111 = vector.broadcast %cst_37 : f32 to vector<8x128xf32>
    %112 = arith.addf %111, %110 : vector<8x128xf32>
    %113 = arith.divf %111, %112 : vector<8x128xf32>
    %114 = vector.extract_strided_slice %101 {offsets = [0, 256], sizes = [8, 128], strides = [1, 1]} : vector<8x512xf32> to vector<8x128xf32>
    %115 = math.tanh %114 : vector<8x128xf32>
    %116 = vector.extract_strided_slice %101 {offsets = [0, 384], sizes = [8, 128], strides = [1, 1]} : vector<8x512xf32> to vector<8x128xf32>
    %117 = arith.negf %116 : vector<8x128xf32>
    %118 = math.exp %117 : vector<8x128xf32>
    %cst_38 = arith.constant 1.000000e+00 : f32
    %119 = vector.broadcast %cst_38 : f32 to vector<8x128xf32>
    %120 = arith.addf %119, %118 : vector<8x128xf32>
    %121 = arith.divf %119, %120 : vector<8x128xf32>
    %122 = arith.mulf %113, %93 : vector<8x128xf32>
    %123 = arith.mulf %107, %115 : vector<8x128xf32>
    %124 = arith.addf %122, %123 : vector<8x128xf32>
    %125 = math.tanh %124 : vector<8x128xf32>
    %126 = arith.mulf %121, %125 : vector<8x128xf32>
    %cst_39 = arith.constant dense<0.000000e+00> : vector<1x8xf32>
    %127 = tpu.matmul %0, %126, %cst_39 {dimension_numbers = #tpu.dot_dimension_numbers<[1], [1], [0], [0], [0, 0, 1, 0], [], []>} : vector<1x128xf32>, vector<8x128xf32>, vector<1x8xf32> -> vector<1x8xf32>
    %c4 = arith.constant 4 : index
    %c0_40 = arith.constant 0 : index
    %c0_41 = arith.constant 0 : index
    %128 = vector.load %arg1[%c4, %c0_40, %c0_41] : memref<8x8x512xf32, #tpu.memory_space<vmem>>, vector<1x8x512xf32>
    %129 = vector.shape_cast %128 : vector<1x8x512xf32> to vector<8x512xf32>
    %c0_42 = arith.constant 0 : index
    %c0_43 = arith.constant 0 : index
    %130 = vector.load %arg2[%c0_42, %c0_43] : memref<128x512xf32, #tpu.memory_space<vmem>>, vector<128x512xf32>
    %cst_44 = arith.constant dense<0.000000e+00> : vector<8x512xf32>
    %131 = tpu.matmul %126, %130, %cst_44 {dimension_numbers = #tpu.dot_dimension_numbers<[1], [0], [0], [1], [0, 0, 1, 1], [], []>} : vector<8x128xf32>, vector<128x512xf32>, vector<8x512xf32> -> vector<8x512xf32>
    %132 = arith.addf %129, %131 : vector<8x512xf32>
    %133 = vector.extract_strided_slice %132 {offsets = [0, 0], sizes = [8, 128], strides = [1, 1]} : vector<8x512xf32> to vector<8x128xf32>
    %134 = arith.negf %133 : vector<8x128xf32>
    %135 = math.exp %134 : vector<8x128xf32>
    %cst_45 = arith.constant 1.000000e+00 : f32
    %136 = vector.broadcast %cst_45 : f32 to vector<8x128xf32>
    %137 = arith.addf %136, %135 : vector<8x128xf32>
    %138 = arith.divf %136, %137 : vector<8x128xf32>
    %139 = vector.extract_strided_slice %132 {offsets = [0, 128], sizes = [8, 128], strides = [1, 1]} : vector<8x512xf32> to vector<8x128xf32>
    %140 = arith.negf %139 : vector<8x128xf32>
    %141 = math.exp %140 : vector<8x128xf32>
    %cst_46 = arith.constant 1.000000e+00 : f32
    %142 = vector.broadcast %cst_46 : f32 to vector<8x128xf32>
    %143 = arith.addf %142, %141 : vector<8x128xf32>
    %144 = arith.divf %142, %143 : vector<8x128xf32>
    %145 = vector.extract_strided_slice %132 {offsets = [0, 256], sizes = [8, 128], strides = [1, 1]} : vector<8x512xf32> to vector<8x128xf32>
    %146 = math.tanh %145 : vector<8x128xf32>
    %147 = vector.extract_strided_slice %132 {offsets = [0, 384], sizes = [8, 128], strides = [1, 1]} : vector<8x512xf32> to vector<8x128xf32>
    %148 = arith.negf %147 : vector<8x128xf32>
    %149 = math.exp %148 : vector<8x128xf32>
    %cst_47 = arith.constant 1.000000e+00 : f32
    %150 = vector.broadcast %cst_47 : f32 to vector<8x128xf32>
    %151 = arith.addf %150, %149 : vector<8x128xf32>
    %152 = arith.divf %150, %151 : vector<8x128xf32>
    %153 = arith.mulf %144, %124 : vector<8x128xf32>
    %154 = arith.mulf %138, %146 : vector<8x128xf32>
    %155 = arith.addf %153, %154 : vector<8x128xf32>
    %156 = math.tanh %155 : vector<8x128xf32>
    %157 = arith.mulf %152, %156 : vector<8x128xf32>
    %cst_48 = arith.constant dense<0.000000e+00> : vector<1x8xf32>
    %158 = tpu.matmul %0, %157, %cst_48 {dimension_numbers = #tpu.dot_dimension_numbers<[1], [1], [0], [0], [0, 0, 1, 0], [], []>} : vector<1x128xf32>, vector<8x128xf32>, vector<1x8xf32> -> vector<1x8xf32>
    %c5 = arith.constant 5 : index
    %c0_49 = arith.constant 0 : index
    %c0_50 = arith.constant 0 : index
    %159 = vector.load %arg1[%c5, %c0_49, %c0_50] : memref<8x8x512xf32, #tpu.memory_space<vmem>>, vector<1x8x512xf32>
    %160 = vector.shape_cast %159 : vector<1x8x512xf32> to vector<8x512xf32>
    %c0_51 = arith.constant 0 : index
    %c0_52 = arith.constant 0 : index
    %161 = vector.load %arg2[%c0_51, %c0_52] : memref<128x512xf32, #tpu.memory_space<vmem>>, vector<128x512xf32>
    %cst_53 = arith.constant dense<0.000000e+00> : vector<8x512xf32>
    %162 = tpu.matmul %157, %161, %cst_53 {dimension_numbers = #tpu.dot_dimension_numbers<[1], [0], [0], [1], [0, 0, 1, 1], [], []>} : vector<8x128xf32>, vector<128x512xf32>, vector<8x512xf32> -> vector<8x512xf32>
    %163 = arith.addf %160, %162 : vector<8x512xf32>
    %164 = vector.extract_strided_slice %163 {offsets = [0, 0], sizes = [8, 128], strides = [1, 1]} : vector<8x512xf32> to vector<8x128xf32>
    %165 = arith.negf %164 : vector<8x128xf32>
    %166 = math.exp %165 : vector<8x128xf32>
    %cst_54 = arith.constant 1.000000e+00 : f32
    %167 = vector.broadcast %cst_54 : f32 to vector<8x128xf32>
    %168 = arith.addf %167, %166 : vector<8x128xf32>
    %169 = arith.divf %167, %168 : vector<8x128xf32>
    %170 = vector.extract_strided_slice %163 {offsets = [0, 128], sizes = [8, 128], strides = [1, 1]} : vector<8x512xf32> to vector<8x128xf32>
    %171 = arith.negf %170 : vector<8x128xf32>
    %172 = math.exp %171 : vector<8x128xf32>
    %cst_55 = arith.constant 1.000000e+00 : f32
    %173 = vector.broadcast %cst_55 : f32 to vector<8x128xf32>
    %174 = arith.addf %173, %172 : vector<8x128xf32>
    %175 = arith.divf %173, %174 : vector<8x128xf32>
    %176 = vector.extract_strided_slice %163 {offsets = [0, 256], sizes = [8, 128], strides = [1, 1]} : vector<8x512xf32> to vector<8x128xf32>
    %177 = math.tanh %176 : vector<8x128xf32>
    %178 = vector.extract_strided_slice %163 {offsets = [0, 384], sizes = [8, 128], strides = [1, 1]} : vector<8x512xf32> to vector<8x128xf32>
    %179 = arith.negf %178 : vector<8x128xf32>
    %180 = math.exp %179 : vector<8x128xf32>
    %cst_56 = arith.constant 1.000000e+00 : f32
    %181 = vector.broadcast %cst_56 : f32 to vector<8x128xf32>
    %182 = arith.addf %181, %180 : vector<8x128xf32>
    %183 = arith.divf %181, %182 : vector<8x128xf32>
    %184 = arith.mulf %175, %155 : vector<8x128xf32>
    %185 = arith.mulf %169, %177 : vector<8x128xf32>
    %186 = arith.addf %184, %185 : vector<8x128xf32>
    %187 = math.tanh %186 : vector<8x128xf32>
    %188 = arith.mulf %183, %187 : vector<8x128xf32>
    %cst_57 = arith.constant dense<0.000000e+00> : vector<1x8xf32>
    %189 = tpu.matmul %0, %188, %cst_57 {dimension_numbers = #tpu.dot_dimension_numbers<[1], [1], [0], [0], [0, 0, 1, 0], [], []>} : vector<1x128xf32>, vector<8x128xf32>, vector<1x8xf32> -> vector<1x8xf32>
    %c6 = arith.constant 6 : index
    %c0_58 = arith.constant 0 : index
    %c0_59 = arith.constant 0 : index
    %190 = vector.load %arg1[%c6, %c0_58, %c0_59] : memref<8x8x512xf32, #tpu.memory_space<vmem>>, vector<1x8x512xf32>
    %191 = vector.shape_cast %190 : vector<1x8x512xf32> to vector<8x512xf32>
    %c0_60 = arith.constant 0 : index
    %c0_61 = arith.constant 0 : index
    %192 = vector.load %arg2[%c0_60, %c0_61] : memref<128x512xf32, #tpu.memory_space<vmem>>, vector<128x512xf32>
    %cst_62 = arith.constant dense<0.000000e+00> : vector<8x512xf32>
    %193 = tpu.matmul %188, %192, %cst_62 {dimension_numbers = #tpu.dot_dimension_numbers<[1], [0], [0], [1], [0, 0, 1, 1], [], []>} : vector<8x128xf32>, vector<128x512xf32>, vector<8x512xf32> -> vector<8x512xf32>
    %194 = arith.addf %191, %193 : vector<8x512xf32>
    %195 = vector.extract_strided_slice %194 {offsets = [0, 0], sizes = [8, 128], strides = [1, 1]} : vector<8x512xf32> to vector<8x128xf32>
    %196 = arith.negf %195 : vector<8x128xf32>
    %197 = math.exp %196 : vector<8x128xf32>
    %cst_63 = arith.constant 1.000000e+00 : f32
    %198 = vector.broadcast %cst_63 : f32 to vector<8x128xf32>
    %199 = arith.addf %198, %197 : vector<8x128xf32>
    %200 = arith.divf %198, %199 : vector<8x128xf32>
    %201 = vector.extract_strided_slice %194 {offsets = [0, 128], sizes = [8, 128], strides = [1, 1]} : vector<8x512xf32> to vector<8x128xf32>
    %202 = arith.negf %201 : vector<8x128xf32>
    %203 = math.exp %202 : vector<8x128xf32>
    %cst_64 = arith.constant 1.000000e+00 : f32
    %204 = vector.broadcast %cst_64 : f32 to vector<8x128xf32>
    %205 = arith.addf %204, %203 : vector<8x128xf32>
    %206 = arith.divf %204, %205 : vector<8x128xf32>
    %207 = vector.extract_strided_slice %194 {offsets = [0, 256], sizes = [8, 128], strides = [1, 1]} : vector<8x512xf32> to vector<8x128xf32>
    %208 = math.tanh %207 : vector<8x128xf32>
    %209 = vector.extract_strided_slice %194 {offsets = [0, 384], sizes = [8, 128], strides = [1, 1]} : vector<8x512xf32> to vector<8x128xf32>
    %210 = arith.negf %209 : vector<8x128xf32>
    %211 = math.exp %210 : vector<8x128xf32>
    %cst_65 = arith.constant 1.000000e+00 : f32
    %212 = vector.broadcast %cst_65 : f32 to vector<8x128xf32>
    %213 = arith.addf %212, %211 : vector<8x128xf32>
    %214 = arith.divf %212, %213 : vector<8x128xf32>
    %215 = arith.mulf %206, %186 : vector<8x128xf32>
    %216 = arith.mulf %200, %208 : vector<8x128xf32>
    %217 = arith.addf %215, %216 : vector<8x128xf32>
    %218 = math.tanh %217 : vector<8x128xf32>
    %219 = arith.mulf %214, %218 : vector<8x128xf32>
    %cst_66 = arith.constant dense<0.000000e+00> : vector<1x8xf32>
    %220 = tpu.matmul %0, %219, %cst_66 {dimension_numbers = #tpu.dot_dimension_numbers<[1], [1], [0], [0], [0, 0, 1, 0], [], []>} : vector<1x128xf32>, vector<8x128xf32>, vector<1x8xf32> -> vector<1x8xf32>
    %c7 = arith.constant 7 : index
    %c0_67 = arith.constant 0 : index
    %c0_68 = arith.constant 0 : index
    %221 = vector.load %arg1[%c7, %c0_67, %c0_68] : memref<8x8x512xf32, #tpu.memory_space<vmem>>, vector<1x8x512xf32>
    %222 = vector.shape_cast %221 : vector<1x8x512xf32> to vector<8x512xf32>
    %c0_69 = arith.constant 0 : index
    %c0_70 = arith.constant 0 : index
    %223 = vector.load %arg2[%c0_69, %c0_70] : memref<128x512xf32, #tpu.memory_space<vmem>>, vector<128x512xf32>
    %cst_71 = arith.constant dense<0.000000e+00> : vector<8x512xf32>
    %224 = tpu.matmul %219, %223, %cst_71 {dimension_numbers = #tpu.dot_dimension_numbers<[1], [0], [0], [1], [0, 0, 1, 1], [], []>} : vector<8x128xf32>, vector<128x512xf32>, vector<8x512xf32> -> vector<8x512xf32>
    %225 = arith.addf %222, %224 : vector<8x512xf32>
    %226 = vector.extract_strided_slice %225 {offsets = [0, 0], sizes = [8, 128], strides = [1, 1]} : vector<8x512xf32> to vector<8x128xf32>
    %227 = arith.negf %226 : vector<8x128xf32>
    %228 = math.exp %227 : vector<8x128xf32>
    %cst_72 = arith.constant 1.000000e+00 : f32
    %229 = vector.broadcast %cst_72 : f32 to vector<8x128xf32>
    %230 = arith.addf %229, %228 : vector<8x128xf32>
    %231 = arith.divf %229, %230 : vector<8x128xf32>
    %232 = vector.extract_strided_slice %225 {offsets = [0, 128], sizes = [8, 128], strides = [1, 1]} : vector<8x512xf32> to vector<8x128xf32>
    %233 = arith.negf %232 : vector<8x128xf32>
    %234 = math.exp %233 : vector<8x128xf32>
    %cst_73 = arith.constant 1.000000e+00 : f32
    %235 = vector.broadcast %cst_73 : f32 to vector<8x128xf32>
    %236 = arith.addf %235, %234 : vector<8x128xf32>
    %237 = arith.divf %235, %236 : vector<8x128xf32>
    %238 = vector.extract_strided_slice %225 {offsets = [0, 256], sizes = [8, 128], strides = [1, 1]} : vector<8x512xf32> to vector<8x128xf32>
    %239 = math.tanh %238 : vector<8x128xf32>
    %240 = vector.extract_strided_slice %225 {offsets = [0, 384], sizes = [8, 128], strides = [1, 1]} : vector<8x512xf32> to vector<8x128xf32>
    %241 = arith.negf %240 : vector<8x128xf32>
    %242 = math.exp %241 : vector<8x128xf32>
    %cst_74 = arith.constant 1.000000e+00 : f32
    %243 = vector.broadcast %cst_74 : f32 to vector<8x128xf32>
    %244 = arith.addf %243, %242 : vector<8x128xf32>
    %245 = arith.divf %243, %244 : vector<8x128xf32>
    %246 = arith.mulf %237, %217 : vector<8x128xf32>
    %247 = arith.mulf %231, %239 : vector<8x128xf32>
    %248 = arith.addf %246, %247 : vector<8x128xf32>
    %249 = math.tanh %248 : vector<8x128xf32>
    %250 = arith.mulf %245, %249 : vector<8x128xf32>
    %cst_75 = arith.constant dense<0.000000e+00> : vector<1x8xf32>
    %251 = tpu.matmul %0, %250, %cst_75 {dimension_numbers = #tpu.dot_dimension_numbers<[1], [1], [0], [0], [0, 0, 1, 0], [], []>} : vector<1x128xf32>, vector<8x128xf32>, vector<1x8xf32> -> vector<1x8xf32>
    %252 = tpu.concatenate %34, %65, %96, %127, %158, %189, %220, %251 in 0 : vector<1x8xf32>, vector<1x8xf32>, vector<1x8xf32>, vector<1x8xf32>, vector<1x8xf32>, vector<1x8xf32>, vector<1x8xf32>, vector<1x8xf32> -> vector<8x8xf32>
    %253 = vector.broadcast %1 : f32 to vector<8x8xf32>
    %254 = arith.addf %252, %253 : vector<8x8xf32>
    %255 = arith.negf %254 : vector<8x8xf32>
    %256 = math.exp %255 : vector<8x8xf32>
    %cst_76 = arith.constant 1.000000e+00 : f32
    %257 = vector.broadcast %cst_76 : f32 to vector<8x8xf32>
    %258 = arith.addf %257, %256 : vector<8x8xf32>
    %259 = arith.divf %257, %258 : vector<8x8xf32>
    %c0_77 = arith.constant 0 : index
    %c0_78 = arith.constant 0 : index
    %260 = vector.load %arg5[%c0_77, %c0_78] : memref<8x8xf32, #tpu.memory_space<vmem>>, vector<8x8xf32>
    tpu.vector_store %arg5[%c0_77, %c0_78], %259 {strides = array<i32>} : memref<8x8xf32, #tpu.memory_space<vmem>>, vector<8x8xf32>,
    return
  }
  func.func @transform_0(%arg0: i32) -> (i32, i32, i32) {
    %c0_i32 = arith.constant 0 : i32
    %c0_i32_0 = arith.constant 0 : i32
    %c0_i32_1 = arith.constant 0 : i32
    return %c0_i32, %arg0, %c0_i32_0 : i32, i32, i32
  }
  func.func @transform_1(%arg0: i32) -> (i32, i32) {
    %c0_i32 = arith.constant 0 : i32
    %c0_i32_0 = arith.constant 0 : i32
    %c0_i32_1 = arith.constant 0 : i32
    return %c0_i32, %c0_i32_0 : i32, i32
  }
  func.func @transform_2(%arg0: i32) -> (i32, i32) {
    %c0_i32 = arith.constant 0 : i32
    %c0_i32_0 = arith.constant 0 : i32
    %c0_i32_1 = arith.constant 0 : i32
    return %c0_i32, %c0_i32_0 : i32, i32
  }
  func.func @transform_3(%arg0: i32) -> i32 {
    %c0_i32 = arith.constant 0 : i32
    %c0_i32_0 = arith.constant 0 : i32
    return %c0_i32 : i32
  }
  func.func @transform_4(%arg0: i32) -> (i32, i32) {
    %c0_i32 = arith.constant 0 : i32
    %c0_i32_0 = arith.constant 0 : i32
    return %c0_i32, %arg0 : i32, i32
  }
}

</mosaic_0001>

<bundles_post_ra>
// kernel: tpu_custom_call.1
= control target key start
LH: loop header
LB: loop body
LE: loop exit
PB: predicated region body
PF: predicated region fallthrough
CT: control target
= control target key end

     0   :  { %10 = vsyncpa [#allocation4], 0  ;;  %s3428_s0 = inlined_call_operand.hbm [shape: f32[8,8,512], index: 0, kind: input, shape index: {}]   ;;  %s3429_s1 = inlined_call_operand.hbm [shape: f32[128,512], index: 1, kind: input, shape index: {}]   ;;  %s3430_s2 = inlined_call_operand.vmem [shape: f32[1,128], index: 2, kind: input, shape index: {}]   ;;  %s3431_s3 = inlined_call_operand.<no memory space> [shape: f32[1], index: 3, kind: input, shape index: {}]   ;;  %s3432_s4 = inlined_call_operand.hbm [shape: f32[8,8], index: 4, kind: output, shape index: {}]  }
   0x1   :  { %11 = vsyncpa [#allocation7], 0 }
   0x2   :  { %12 = vsyncpa [#allocation5], 0  ;;  %s2938_s15 = smov [#allocation3]   ;;  %s2866_s19 = scalar_lea.hbm %s3428_s0, 4096 }
   0x3   :  { %s18_s16 = sshll.u32 %s2938_s15, 4  ;;  %p2867_p0 = scmp.ne.s32.totalorder %s3428_s0, %s2866_s19  ;;  %s19_s16 = int_to_ptr.vmem [resolvable:$true] %s18_s16 }
   0x4   :  { %p2870_p1 = scmp.lt.u32.totalorder %s2866_s19, %s3428_s0 }
   0x6   :  { %p2872_p2 = pnand %p2870_p1, %p2867_p0 }
   0x8   :  { %2875 = shalt.err (!%p2872_p2)
}
   0x9   :  { %s2876_s24 = scalar_lea.vmem %s19_s16, 4096  ;;  %p2881_p4 = scmp.lt.s32.totalorder %s19_s16, %s19_s16 }
   0xa   :  { %p2877_p3 = scmp.ne.s32.totalorder %s19_s16, %s2876_s24  ;;  %p2882_p5 = scmp.lt.s32.totalorder %s2876_s24, %s2876_s24 }
   0xc   :  { %p2883_p6 = por %p2882_p5, %p2881_p4 }
   0xe   :  { %p2884_p7 = pnand %p2883_p6, %p2877_p3 }
  0x10   :  { %2887 = shalt.err (!%p2884_p7)
}
  0x11   :  { %s2939_s25 = smov 512   ;;  %s2940_s26 = smov 32  }
  0x12   :  { %24 = dma.hbm_to_vmem [thread:$0]  %s3428_s0, 4096, %s19_s16, [#allocation4], %s2939_s25, %s2939_s25, %s2940_s26  }
  0x13   :  { %s2941_s29 = smov [#allocation6]   ;;  %s2888_s7 = scalar_lea.hbm %s3429_s1, 8192 }
  0x14   :  { %s30_s30 = sshll.u32 %s2941_s29, 4  ;;  %p2889_p8 = scmp.ne.s32.totalorder %s3429_s1, %s2888_s7  ;;  %s31_s30 = int_to_ptr.vmem [resolvable:$true] %s30_s30 }
  0x15   :  { %p2892_p9 = scmp.lt.u32.totalorder %s2888_s7, %s3429_s1 }
  0x17   :  { %p2894_p10 = pnand %p2892_p9, %p2889_p8 }
  0x19   :  { %2897 = shalt.err (!%p2894_p10)
}
  0x1a   :  { %s2898_s12 = scalar_lea.vmem %s31_s30, 8192  ;;  %p2903_p12 = scmp.lt.s32.totalorder %s31_s30, %s31_s30 }
  0x1b   :  { %p2899_p11 = scmp.ne.s32.totalorder %s31_s30, %s2898_s12  ;;  %p2904_p13 = scmp.lt.s32.totalorder %s2898_s12, %s2898_s12 }
  0x1d   :  { %p2905_p0 = por %p2904_p13, %p2903_p12 }
  0x1f   :  { %p2906_p1 = pnand %p2905_p0, %p2899_p11 }
  0x21   :  { %2909 = shalt.err (!%p2906_p1)
}
  0x22   :  { %36 = dma.hbm_to_vmem [thread:$0]  %s3429_s1, 8192, %s31_s30, [#allocation7], %s2939_s25, %s2939_s25, %s2940_s26  }
  0x23   :  { %2932 = dma.done.wait [#allocation4], 4096  }
  0x24   :  { %2933 = vsyncadd [#allocation4], 4294963200 }
  0x25   :  { %2934 = dma.done.wait [#allocation7], 8192  }
  0x26   :  { %2935 = vsyncadd [#allocation7], 4294959104  ;;  %v2942_v0 = vmov 0.0   ;;  %v54_v1 = vld [vmem:[#allocation6 + $0x8] sm:$0xff]  ;;  %v53_v3 = vld [vmem:[#allocation6] sm:$0xff]  ;;  %vm2943_vm0 = vmmov 0  }
  0x27   :  { %181 = vmatprep.mubr.f32.mxu0 %v2942_v0  ;;  %252 = vmatprep.mubr.f32.mxu1 %v2942_v0  ;;  %v58_v2 = vld [vmem:[#allocation6 + $0x28] sm:$0xff]  ;;  %v57_v5 = vld [vmem:[#allocation6 + $0x20] sm:$0xff]  ;;  %v56_v19 = vld [vmem:[#allocation6 + $0x18] sm:$0xff]  ;;  %vm2093_vm1 = vcmask 1040384   ;;  %vm2095_vm2 = vcmask 1041408   ;;  %vm2097_vm3 = vcmask 1042432  }
  0x28   :  { %v2996_v4 = vpack.c.bf16 %v58_v2, %v54_v1  ;;  %v62_v6 = vld [vmem:[#allocation6 + $0x48] sm:$0xff]  ;;  %v2998_v8 = vpack.c.bf16 %v57_v5, %v53_v3  ;;  %v61_v10 = vld [vmem:[#allocation6 + $0x40] sm:$0xff]  ;;  %v60_v20 = vld [vmem:[#allocation6 + $0x38] sm:$0xff]  ;;  %vm2099_vm4 = vcmask 1043456   ;;  %vm2101_vm5 = vcmask 1044480   ;;  %s2944_s19 = smov [#allocation8]  }
  0x29   :  { %v66_v7 = vld [vmem:[#allocation6 + $0x68] sm:$0xff]  ;;  %v65_v11 = vld [vmem:[#allocation6 + $0x60] sm:$0xff]  ;;  %v3009_v22 = vpack.c.bf16 %v60_v20, %v56_v19  ;;  %v55_v23 = vld [vmem:[#allocation6 + $0x10] sm:$0xff]  ;;  %vm2103_vm6 = vcmask 1045504   ;;  %vm2105_vm7 = vcmask 1046528   ;;  %s2123_s20 = sshll.u32 %s2944_s19, 4  ;;  %s2124_s20 = int_to_ptr.vmem [resolvable:$true] %s2123_s20 }
  0x2a   :  { %v3000_v9 = vpack.c.bf16 %v66_v7, %v62_v6  ;;  %v70_v12 = vld [vmem:[#allocation6 + $0x88] sm:$0xff]  ;;  %2215 = vmatprep.subr.bf16.mxu0 %v2996_v4  ;;  %v3004_v14 = vpack.c.bf16 %v65_v11, %v61_v10  ;;  %v69_v15 = vld [vmem:[#allocation6 + $0x80] sm:$0xff]  ;;  %v59_v24 = vld [vmem:[#allocation6 + $0x30] sm:$0xff]  ;;  %vm2115_vm8 = vcmask 64512   ;;  %p2915_p3 = scmp.lt.s32.totalorder %s2124_s20, %s2124_s20 }
  0x2b   :  { %v74_v13 = vld [vmem:[#allocation6 + $0xa8] sm:$0xff]  ;;  %2217 = vmatpush1.bf16.msra.mxu0 %v2998_v8  ;;  %v73_v16 = vld [vmem:[#allocation6 + $0xa0] sm:$0xff]  ;;  %v3011_v25 = vpack.c.bf16 %v59_v24, %v55_v23  ;;  %2247 = vmatprep.subr.bf16.mxu1 %v3009_v22  ;;  %v64_v27 = vld [vmem:[#allocation6 + $0x58] sm:$0xff] }
  0x2c   :  { %2219 = vmatprep.subr.bf16.mxu0 %v3000_v9  ;;  %v3007_v17 = vpack.c.bf16 %v74_v13, %v70_v12  ;;  %v78_v18 = vld [vmem:[#allocation6 + $0xc8] sm:$0xff]  ;;  %v3014_v26 = vpack.c.bf16 %v73_v16, %v69_v15  ;;  %v68_v28 = vld [vmem:[#allocation6 + $0x78] sm:$0xff]  ;;  %v63_v29 = vld [vmem:[#allocation6 + $0x50] sm:$0xff] }
  0x2d   :  { %v82_v21 = vld [vmem:[#allocation6 + $0xe8] sm:$0xff]  ;;  %v77_v31 = vld [vmem:[#allocation6 + $0xc0] sm:$0xff]  ;;  %2249 = vmatpush1.bf16.msra.mxu1 %v3011_v25  ;;  %v3021_v33 = vpack.c.bf16 %v68_v28, %v64_v27  ;;  %v67_v34 = vld [vmem:[#allocation6 + $0x70] sm:$0xff] }
  0x2e   :  { %v3018_v30 = vpack.c.bf16 %v82_v21, %v78_v18  ;;  %v81_v32 = vld [vmem:[#allocation6 + $0xe0] sm:$0xff]  ;;  %v86_v35 = vld [vmem:[#allocation6 + $0x108] sm:$0xff]  ;;  %v3023_v37 = vpack.c.bf16 %v67_v34, %v63_v29  ;;  %v72_v38 = vld [vmem:[#allocation6 + $0x98] sm:$0xff] }
  0x2f   :  { %2221 = vmatpush1.bf16.msra.mxu0 %v3004_v14  ;;  %v90_v36 = vld [vmem:[#allocation6 + $0x128] sm:$0xff]  ;;  %2251 = vmatprep.subr.bf16.mxu1 %v3021_v33  ;;  %v76_v39 = vld [vmem:[#allocation6 + $0xb8] sm:$0xff]  ;;  %v71_v40 = vld [vmem:[#allocation6 + $0x90] sm:$0xff]  ;;  %v3027_v42 = vpack.c.bf16 %v81_v32, %v77_v31 }
  0x30   :  { %2223 = vmatprep.subr.bf16.mxu0 %v3007_v17  ;;  %v75_v41 = vld [vmem:[#allocation6 + $0xb0] sm:$0xff]  ;;  %v85_v43 = vld [vmem:[#allocation6 + $0x100] sm:$0xff]  ;;  %v3029_v45 = vpack.c.bf16 %v76_v39, %v72_v38  ;;  %v3032_v46 = vpack.c.bf16 %v90_v36, %v86_v35  ;;  %v94_v47 = vld [vmem:[#allocation6 + $0x148] sm:$0xff] }
  0x31   :  { %v89_v44 = vld [vmem:[#allocation6 + $0x120] sm:$0xff]  ;;  %2253 = vmatpush1.bf16.msra.mxu1 %v3023_v37  ;;  %v3035_v48 = vpack.c.bf16 %v75_v41, %v71_v40  ;;  %v80_v49 = vld [vmem:[#allocation6 + $0xd8] sm:$0xff]  ;;  %v98_v51 = vld [vmem:[#allocation6 + $0x168] sm:$0xff] }
  0x32   :  { %v84_v50 = vld [vmem:[#allocation6 + $0xf8] sm:$0xff]  ;;  %2255 = vmatprep.subr.bf16.mxu1 %v3029_v45  ;;  %v79_v53 = vld [vmem:[#allocation6 + $0xd0] sm:$0xff]  ;;  %v3041_v55 = vpack.c.bf16 %v89_v44, %v85_v43  ;;  %v3044_v58 = vpack.c.bf16 %v98_v51, %v94_v47  ;;  %v93_v59 = vld [vmem:[#allocation6 + $0x140] sm:$0xff] }
  0x33   :  { %2225 = vmatpush1.bf16.msra.mxu0 %v3014_v26  ;;  %v3038_v52 = vpack.c.bf16 %v84_v50, %v80_v49  ;;  %v83_v54 = vld [vmem:[#allocation6 + $0xf0] sm:$0xff]  ;;  %v88_v56 = vld [vmem:[#allocation6 + $0x118] sm:$0xff]  ;;  %v97_v60 = vld [vmem:[#allocation6 + $0x160] sm:$0xff] }
  0x34   :  { %2227 = vmatprep.subr.bf16.mxu0 %v3018_v30  ;;  %v92_v57 = vld [vmem:[#allocation6 + $0x138] sm:$0xff]  ;;  %v102_v61 = vld [vmem:[#allocation6 + $0x188] sm:$0xff]  ;;  %v3047_v62 = vpack.c.bf16 %v83_v54, %v79_v53  ;;  %v87_v2 = vld [vmem:[#allocation6 + $0x110] sm:$0xff]  ;;  %v3053_v7 = vpack.c.bf16 %v97_v60, %v93_v59 }
  0x35   :  { %2257 = vmatpush1.bf16.msra.mxu1 %v3035_v48  ;;  %v106_v63 = vld [vmem:[#allocation6 + $0x1a8] sm:$0xff]  ;;  %v3050_v1 = vpack.c.bf16 %v92_v57, %v88_v56  ;;  %v91_v3 = vld [vmem:[#allocation6 + $0x130] sm:$0xff]  ;;  %v96_v5 = vld [vmem:[#allocation6 + $0x158] sm:$0xff] }
  0x36   :  { %2259 = vmatprep.subr.bf16.mxu1 %v3038_v52  ;;  %v100_v6 = vld [vmem:[#allocation6 + $0x178] sm:$0xff]  ;;  %v3056_v10 = vpack.c.bf16 %v106_v63, %v102_v61  ;;  %v101_v11 = vld [vmem:[#allocation6 + $0x180] sm:$0xff]  ;;  %v110_v13 = vld [vmem:[#allocation6 + $0x1c8] sm:$0xff]  ;;  %v3059_v15 = vpack.c.bf16 %v91_v3, %v87_v2 }
  0x37   :  { %2229 = vmatpush1.bf16.msra.mxu0 %v3027_v42  ;;  %v105_v12 = vld [vmem:[#allocation6 + $0x1a0] sm:$0xff]  ;;  %v114_v16 = vld [vmem:[#allocation6 + $0x1e8] sm:$0xff]  ;;  %v3062_v18 = vpack.c.bf16 %v100_v6, %v96_v5  ;;  %v95_v19 = vld [vmem:[#allocation6 + $0x150] sm:$0xff] }
  0x38   :  { %2231 = vmatprep.subr.bf16.mxu0 %v3032_v46  ;;  %v99_v20 = vld [vmem:[#allocation6 + $0x170] sm:$0xff]  ;;  %v104_v21 = vld [vmem:[#allocation6 + $0x198] sm:$0xff]  ;;  %v3065_v24 = vpack.c.bf16 %v105_v12, %v101_v11  ;;  %v3068_v27 = vpack.c.bf16 %v114_v16, %v110_v13  ;;  %v109_v28 = vld [vmem:[#allocation6 + $0x1c0] sm:$0xff] }
  0x39   :  { %2261 = vmatpush1.bf16.msra.mxu1 %v3047_v62  ;;  %v108_v23 = vld [vmem:[#allocation6 + $0x1b8] sm:$0xff]  ;;  %v113_v29 = vld [vmem:[#allocation6 + $0x1e0] sm:$0xff]  ;;  %v3071_v31 = vpack.c.bf16 %v99_v20, %v95_v19  ;;  %v103_v34 = vld [vmem:[#allocation6 + $0x190] sm:$0xff] }
  0x3a   :  { %2263 = vmatprep.subr.bf16.mxu1 %v3050_v1  ;;  %v3074_v32 = vpack.c.bf16 %v108_v23, %v104_v21  ;;  %v107_v35 = vld [vmem:[#allocation6 + $0x1b0] sm:$0xff]  ;;  %v112_v36 = vld [vmem:[#allocation6 + $0x1d8] sm:$0xff]  ;;  %v3077_v39 = vpack.c.bf16 %v113_v29, %v109_v28  ;;  %v49_v49 = vld [vmem:[#allocation3] sm:$0xff] }
  0x3b   :  { %2233 = vmatpush1.bf16.msra.mxu0 %v3041_v55  ;;  %v116_v38 = vld [vmem:[#allocation6 + $0x1f8] sm:$0xff]  ;;  %v3081_v40 = vpack.c.bf16 %v107_v35, %v103_v34  ;;  %v111_v43 = vld [vmem:[#allocation6 + $0x1d0] sm:$0xff]  ;;  %v50_v50 = vld [vmem:[#allocation3 + $0x8] sm:$0xff] }
  0x3c   :  { %2235 = vmatprep.subr.bf16.mxu0 %v3044_v58  ;;  %v3084_v41 = vpack.c.bf16 %v116_v38, %v112_v36  ;;  %v115_v44 = vld [vmem:[#allocation6 + $0x1f0] sm:$0xff]  ;;  %v52_v60 = vld [vmem:[#allocation3 + $0x18] sm:$0xff] }
  0x3d   :  { %2265 = vmatpush1.bf16.msra.mxu1 %v3059_v15  ;;  %v3088_v47 = vpack.c.bf16 %v115_v44, %v111_v43  ;;  %v51_v3 = vld [vmem:[#allocation3 + $0x10] sm:$0xff]  ;;  %v3121_v44 = vld [vmem:[%s3430_s2] sm:$0x1] }
  0x3e   :  { %2267 = vmatprep.subr.bf16.mxu1 %v3062_v18 }
  0x3f   :  { %2237 = vmatpush1.bf16.msra.mxu0 %v3053_v7 }
  0x40   :  { %2239 = vmatprep.subr.bf16.mxu0 %v3056_v10 }
  0x41   :  { %2269 = vmatpush1.bf16.msra.mxu1 %v3071_v31 }
  0x42   :  { %2271 = vmatprep.subr.bf16.mxu1 %v3074_v32 }
  0x43   :  { %2241 = vmatpush1.bf16.msra.mxu0 %v3065_v24 }
  0x44   :  { %2243 = vmatprep.subr.bf16.mxu0 %v3068_v27 }
  0x45   :  { %2273 = vmatpush1.bf16.msra.mxu1 %v3081_v40 }
  0x46   :  { %2275 = vmatprep.subr.bf16.mxu1 %v3084_v41 }
  0x47   :  { %2245 = vmatpush1.bf16.msra.mxu0 %v3077_v39 }
  0x48   :  { %2174 = vmatprep.subr.mxu0 %v2942_v0 }
  0x49   :  { %2277 = vmatpush1.bf16.msra.mxu1 %v3088_v47 }
  0x4a   :  { %182 = vmatmul.mubr.f32.vlgmr.msra.gmra.mrb[0].mxu0 %v2942_v0  ;;  %2279 = vmatprep.subr.bf16.mxu1 %v2996_v4 }
  0x4b   :  { %2176 = vmatprep.mubr.msk.f32.mxu0 %vm2943_vm0, %v2942_v0 }
  0x4c   :  { %253 = vmatmul.mubr.f32.vlgmr.msra.gmra.mrb[0].mxu1 %v2942_v0 }
  0x4d   :  { %2281 = vmatpush1.bf16.msra.mxu1 %v2998_v8  ;;  %426 = vmatprep.mubr.f32.mxu1 %v2942_v0 }
  0x4e   :  { %2283 = vmatprep.subr.bf16.mxu1 %v3000_v9 }
  0x51   :  { %2285 = vmatpush1.bf16.msra.mxu1 %v3004_v14 }
  0x52   :  { %2287 = vmatprep.subr.bf16.mxu1 %v3007_v17 }
  0x55   :  { %2289 = vmatpush1.bf16.msra.mxu1 %v3014_v26 }
  0x56   :  { %2291 = vmatprep.subr.bf16.mxu1 %v3018_v30 }
  0x59   :  { %2293 = vmatpush1.bf16.msra.mxu1 %v3027_v42 }
  0x5a   :  { %2295 = vmatprep.subr.bf16.mxu1 %v3032_v46 }
  0x5d   :  { %2297 = vmatpush1.bf16.msra.mxu1 %v3041_v55 }
  0x5e   :  { %2299 = vmatprep.subr.bf16.mxu1 %v3044_v58 }
  0x61   :  { %2301 = vmatpush1.bf16.msra.mxu1 %v3053_v7 }
  0x62   :  { %2303 = vmatprep.subr.bf16.mxu1 %v3056_v10 }
  0x65   :  { %2305 = vmatpush1.bf16.msra.mxu1 %v3065_v24 }
  0x66   :  { %2307 = vmatprep.subr.bf16.mxu1 %v3068_v27 }
  0x69   :  { %2309 = vmatpush1.bf16.msra.mxu1 %v3077_v39 }
  0x6a   :  { %2179 = vmatprep.subr.mxu1 %v2942_v0 }
 0x11d   :  { %v183_v51 = vpop.f32.mrb[0].mxu0 }
 0x11e   :  { %v259_v53 = vadd.f32 %v183_v51, %v49_v49  ;;  %v185_v54 = vpop.f32.mrb[1].mxu0 }
 0x11f   :  { %v260_v56 = vadd.f32 %v185_v54, %v50_v50  ;;  %v254_v61 = vpop.f32.mrb[0].mxu1  ;;  %v359_v54 = vld [vmem:[#allocation3 + $0x28] sm:$0xff] }
 0x120   :  { %v2133_v57 = vmul.f32 -1.442695, %v259_v53  ;;  %v256_v63 = vpop.f32.mrb[1].mxu1  ;;  %v261_v6 = vadd.f32 %v254_v61, %v51_v3 }
 0x121   :  { %v2134_v59 = vmul.f32 -1.442695, %v260_v56  ;;  %v262_v2 = vadd.f32 %v256_v63, %v52_v60  ;;  %v358_v56 = vld [vmem:[#allocation3 + $0x20] sm:$0xff] }
 0x122   :  { %2733 = vpow2.f32 %v2133_v57 }
 0x123   :  { %2735 = vpow2.f32 %v2134_v59  ;;  %v2135_v5 = vmul.f32 -1.442695, %v262_v2 }
 0x125   :  { %2737 = vpow2.f32 %v2135_v5 }
 0x126   :  { %2739 = vtanh.f32 %v261_v6  ;;  %v360_v6 = vld [vmem:[#allocation3 + $0x30] sm:$0xff] }
 0x12c   :  { %v2734_v11 = vpop.eup %2733 }
 0x12d   :  { %v2736_v12 = vpop.eup %2735  ;;  %v266_v13 = vadd.f32 1.0, %v2734_v11  ;;  %v361_v11 = vld [vmem:[#allocation3 + $0x38] sm:$0xff] }
 0x12e   :  { %v272_v16 = vadd.f32 1.0, %v2736_v12 }
 0x12f   :  { %2741 = vrcp.f32 %v266_v13  ;;  %v2738_v19 = vpop.eup %2737 }
 0x130   :  { %2743 = vrcp.f32 %v272_v16  ;;  %v2740_v20 = vpop.eup %2739  ;;  %v279_v23 = vadd.f32 1.0, %v2738_v19 }
 0x132   :  { %2745 = vrcp.f32 %v279_v23 }
 0x139   :  { %v2742_v21 = vpop.eup %2741 }
 0x13a   :  { %v2744_v28 = vpop.eup %2743  ;;  %v283_v29 = vmul.f32 %v2742_v21, %v2740_v20 }
 0x13b   :  { %v282_v34 = vmul.f32 0.0, %v2744_v28 }
 0x13c   :  { %v2746_v36 = vpop.eup %2745 }
 0x13d   :  { %v3115_v35 = vadd.f32 %v283_v29, %v282_v34 }
 0x13f   :  { %2747 = vtanh.f32 %v3115_v35 }
 0x149   :  { %v2748_v38 = vpop.eup %2747 }
 0x14a   :  { %v286_v43 = vmul.f32 %v2748_v38, %v2746_v36 }
 0x14c   :  { %2175 = vmatpush3.xpose.msra.mxu0 %v286_v43  ;;  %427 = vmatmul.mubr.f32.vlgmr.msra.gmra.mrb[2].mxu1 %v286_v43 }
 0x14d   :  { %2311 = vmatprep.subr.bf16.mxu0 %v3009_v22  ;;  %2181 = vmatprep.mubr.msk.f32.mxu1 %vm2943_vm0, %v2942_v0 }
 0x14f   :  { %2177 = vmatmul.mubr.f32.vlgmr.msra.gmra.mrb[2].mxu0 %v3121_v44 }
 0x150   :  { %2313 = vmatpush1.bf16.msra.mxu0 %v3011_v25  ;;  %497 = vmatprep.mubr.f32.mxu0 %v2942_v0 }
 0x151   :  { %2315 = vmatprep.subr.bf16.mxu0 %v3021_v33 }
 0x154   :  { %2317 = vmatpush1.bf16.msra.mxu0 %v3023_v37 }
 0x155   :  { %2319 = vmatprep.subr.bf16.mxu0 %v3029_v45 }
 0x158   :  { %2321 = vmatpush1.bf16.msra.mxu0 %v3035_v48 }
 0x159   :  { %2323 = vmatprep.subr.bf16.mxu0 %v3038_v52 }
 0x15c   :  { %2325 = vmatpush1.bf16.msra.mxu0 %v3047_v62 }
 0x15d   :  { %2327 = vmatprep.subr.bf16.mxu0 %v3050_v1 }
 0x160   :  { %2329 = vmatpush1.bf16.msra.mxu0 %v3059_v15 }
 0x161   :  { %2331 = vmatprep.subr.bf16.mxu0 %v3062_v18 }
 0x164   :  { %2333 = vmatpush1.bf16.msra.mxu0 %v3071_v31 }
 0x165   :  { %2335 = vmatprep.subr.bf16.mxu0 %v3074_v32 }
 0x168   :  { %2337 = vmatpush1.bf16.msra.mxu0 %v3081_v40 }
 0x169   :  { %2339 = vmatprep.subr.bf16.mxu0 %v3084_v41 }
 0x16c   :  { %2341 = vmatpush1.bf16.msra.mxu0 %v3088_v47 }
 0x16d   :  { %2343 = vmatprep.subr.bf16.mxu0 %v2996_v4 }
 0x16f   :  { %498 = vmatmul.mubr.f32.vlgmr.msra.gmra.mrb[4].mxu0 %v286_v43 }
 0x170   :  { %2345 = vmatpush1.bf16.msra.mxu0 %v2998_v8  ;;  %671 = vmatprep.mubr.f32.mxu0 %v2942_v0 }
 0x171   :  { %2347 = vmatprep.subr.bf16.mxu0 %v3000_v9 }
 0x174   :  { %2349 = vmatpush1.bf16.msra.mxu0 %v3004_v14 }
 0x175   :  { %2351 = vmatprep.subr.bf16.mxu0 %v3007_v17 }
 0x178   :  { %2353 = vmatpush1.bf16.msra.mxu0 %v3014_v26 }
 0x179   :  { %2355 = vmatprep.subr.bf16.mxu0 %v3018_v30 }
 0x17c   :  { %2357 = vmatpush1.bf16.msra.mxu0 %v3027_v42 }
 0x17d   :  { %2359 = vmatprep.subr.bf16.mxu0 %v3032_v46 }
 0x180   :  { %2361 = vmatpush1.bf16.msra.mxu0 %v3041_v55 }
 0x181   :  { %2363 = vmatprep.subr.bf16.mxu0 %v3044_v58 }
 0x184   :  { %2365 = vmatpush1.bf16.msra.mxu0 %v3053_v7 }
 0x185   :  { %2367 = vmatprep.subr.bf16.mxu0 %v3056_v10 }
 0x188   :  { %2369 = vmatpush1.bf16.msra.mxu0 %v3065_v24 }
 0x189   :  { %2371 = vmatprep.subr.bf16.mxu0 %v3068_v27 }
 0x18c   :  { %2373 = vmatpush1.bf16.msra.mxu0 %v3077_v39 }
 0x18d   :  { %2184 = vmatprep.subr.mxu0 %v2942_v0 }
 0x21f   :  { %v428_v49 = vpop.f32.mrb[2].mxu1 }
 0x220   :  { %v430_v50 = vpop.f32.mrb[3].mxu1  ;;  %v504_v59 = vadd.f32 %v428_v49, %v358_v56 }
 0x221   :  { %v505_v57 = vadd.f32 %v430_v50, %v359_v54 }
 0x222   :  { %v3161_v51 = vpop.f32.mrb[2].mxu0  ;;  %v2136_v61 = vmul.f32 -1.442695, %v504_v59 }
 0x223   :  { %v2178_v53 = vpop.f32.mrb[3].mxu0  ;;  %v2137_v60 = vmul.f32 -1.442695, %v505_v57 }
 0x225   :  { %2749 = vpow2.f32 %v2137_v60 }
 0x226   :  { %2751 = vpow2.f32 %v2136_v61  ;;  %v604_v61 = vld [vmem:[#allocation3 + $0x48] sm:$0xff] }
 0x22f   :  { %v2750_v63 = vpop.eup %2749 }
 0x230   :  { %v2752_v2 = vpop.eup %2751  ;;  %v517_v3 = vadd.f32 1.0, %v2750_v63  ;;  %v603_v63 = vld [vmem:[#allocation3 + $0x40] sm:$0xff] }
 0x231   :  { %v511_v5 = vadd.f32 1.0, %v2752_v2 }
 0x232   :  { %2753 = vrcp.f32 %v517_v3 }
 0x233   :  { %2755 = vrcp.f32 %v511_v5 }
 0x23c   :  { %v2754_v21 = vpop.eup %2753 }
 0x23d   :  { %v2756_v23 = vpop.eup %2755  ;;  %v527_v29 = vmul.f32 %v2754_v21, %v3115_v35 }
 0x242   :  { %v499_v12 = vpop.f32.mrb[4].mxu0 }
 0x243   :  { %v506_v13 = vadd.f32 %v499_v12, %v360_v6  ;;  %v501_v16 = vpop.f32.mrb[5].mxu0 }
 0x244   :  { %v507_v19 = vadd.f32 %v501_v16, %v361_v11 }
 0x245   :  { %2757 = vtanh.f32 %v506_v13 }
 0x246   :  { %v2138_v20 = vmul.f32 -1.442695, %v507_v19  ;;  %v605_v19 = vld [vmem:[#allocation3 + $0x50] sm:$0xff] }
 0x248   :  { %2759 = vpow2.f32 %v2138_v20  ;;  %v606_v20 = vld [vmem:[#allocation3 + $0x58] sm:$0xff] }
 0x24f   :  { %v2758_v28 = vpop.eup %2757 }
 0x250   :  { %v528_v34 = vmul.f32 %v2758_v28, %v2756_v23 }
 0x252   :  { %v2760_v36 = vpop.eup %2759  ;;  %v3164_v38 = vadd.f32 %v528_v34, %v527_v29 }
 0x253   :  { %v524_v43 = vadd.f32 1.0, %v2760_v36 }
 0x254   :  { %2761 = vtanh.f32 %v3164_v38 }
 0x255   :  { %2763 = vrcp.f32 %v524_v43 }
 0x25e   :  { %v2762_v49 = vpop.eup %2761 }
 0x25f   :  { %v2764_v50 = vpop.eup %2763 }
 0x260   :  { %v531_v53 = vmul.f32 %v2764_v50, %v2762_v49 }
 0x262   :  { %2180 = vmatpush3.xpose.msra.mxu1 %v531_v53  ;;  %672 = vmatmul.mubr.f32.vlgmr.msra.gmra.mrb[6].mxu0 %v531_v53 }
 0x263   :  { %2375 = vmatprep.subr.bf16.mxu1 %v3009_v22  ;;  %2186 = vmatprep.mubr.msk.f32.mxu0 %vm2943_vm0, %v2942_v0 }
 0x265   :  { %2182 = vmatmul.mubr.f32.vlgmr.msra.gmra.mrb[4].mxu1 %v3121_v44 }
 0x266   :  { %2377 = vmatpush1.bf16.msra.mxu1 %v3011_v25  ;;  %742 = vmatprep.mubr.f32.mxu1 %v2942_v0 }
 0x267   :  { %2379 = vmatprep.subr.bf16.mxu1 %v3021_v33 }
 0x26a   :  { %2381 = vmatpush1.bf16.msra.mxu1 %v3023_v37 }
 0x26b   :  { %2383 = vmatprep.subr.bf16.mxu1 %v3029_v45 }
 0x26e   :  { %2385 = vmatpush1.bf16.msra.mxu1 %v3035_v48 }
 0x26f   :  { %2387 = vmatprep.subr.bf16.mxu1 %v3038_v52 }
 0x272   :  { %2389 = vmatpush1.bf16.msra.mxu1 %v3047_v62 }
 0x273   :  { %2391 = vmatprep.subr.bf16.mxu1 %v3050_v1 }
 0x276   :  { %2393 = vmatpush1.bf16.msra.mxu1 %v3059_v15 }
 0x277   :  { %2395 = vmatprep.subr.bf16.mxu1 %v3062_v18 }
 0x27a   :  { %2397 = vmatpush1.bf16.msra.mxu1 %v3071_v31 }
 0x27b   :  { %2399 = vmatprep.subr.bf16.mxu1 %v3074_v32 }
 0x27e   :  { %2401 = vmatpush1.bf16.msra.mxu1 %v3081_v40 }
 0x27f   :  { %2403 = vmatprep.subr.bf16.mxu1 %v3084_v41 }
 0x282   :  { %2405 = vmatpush1.bf16.msra.mxu1 %v3088_v47 }
 0x283   :  { %2407 = vmatprep.subr.bf16.mxu1 %v2996_v4 }
 0x285   :  { %743 = vmatmul.mubr.f32.vlgmr.msra.gmra.mrb[6].mxu1 %v531_v53 }
 0x286   :  { %2409 = vmatpush1.bf16.msra.mxu1 %v2998_v8  ;;  %916 = vmatprep.mubr.f32.mxu1 %v2942_v0 }
 0x287   :  { %2411 = vmatprep.subr.bf16.mxu1 %v3000_v9 }
 0x28a   :  { %2413 = vmatpush1.bf16.msra.mxu1 %v3004_v14 }
 0x28b   :  { %2415 = vmatprep.subr.bf16.mxu1 %v3007_v17 }
 0x28e   :  { %2417 = vmatpush1.bf16.msra.mxu1 %v3014_v26 }
 0x28f   :  { %2419 = vmatprep.subr.bf16.mxu1 %v3018_v30 }
 0x292   :  { %2421 = vmatpush1.bf16.msra.mxu1 %v3027_v42 }
 0x293   :  { %2423 = vmatprep.subr.bf16.mxu1 %v3032_v46 }
 0x296   :  { %2425 = vmatpush1.bf16.msra.mxu1 %v3041_v55 }
 0x297   :  { %2427 = vmatprep.subr.bf16.mxu1 %v3044_v58 }
 0x29a   :  { %2429 = vmatpush1.bf16.msra.mxu1 %v3053_v7 }
 0x29b   :  { %2431 = vmatprep.subr.bf16.mxu1 %v3056_v10 }
 0x29e   :  { %2433 = vmatpush1.bf16.msra.mxu1 %v3065_v24 }
 0x29f   :  { %2435 = vmatprep.subr.bf16.mxu1 %v3068_v27 }
 0x2a2   :  { %2437 = vmatpush1.bf16.msra.mxu1 %v3077_v39 }
 0x2a3   :  { %2189 = vmatprep.subr.mxu1 %v2942_v0 }
 0x335   :  { %v673_v35 = vpop.f32.mrb[6].mxu0 }
 0x336   :  { %v675_v54 = vpop.f32.mrb[7].mxu0  ;;  %v749_v3 = vadd.f32 %v673_v35, %v603_v63 }
 0x337   :  { %v750_v2 = vadd.f32 %v675_v54, %v604_v61 }
 0x338   :  { %v598_v56 = vpop.f32.mrb[4].mxu1  ;;  %v2139_v6 = vmul.f32 -1.442695, %v749_v3 }
 0x339   :  { %v2073_v57 = vrot.slane %v598_v56, 7  ;;  %v2183_v59 = vpop.f32.mrb[5].mxu1  ;;  %v2140_v5 = vmul.f32 -1.442695, %v750_v2 }
 0x33b   :  { %v3206_v60 = vsel %vm2093_vm1, %v3161_v51, %v2073_v57  ;;  %2765 = vpow2.f32 %v2140_v5 }
 0x33c   :  { %2767 = vpow2.f32 %v2139_v6  ;;  %v849_v6 = vld [vmem:[#allocation3 + $0x68] sm:$0xff] }
 0x345   :  { %v2766_v11 = vpop.eup %2765 }
 0x346   :  { %v2768_v12 = vpop.eup %2767  ;;  %v762_v13 = vadd.f32 1.0, %v2766_v11  ;;  %v848_v11 = vld [vmem:[#allocation3 + $0x60] sm:$0xff] }
 0x347   :  { %v756_v16 = vadd.f32 1.0, %v2768_v12 }
 0x348   :  { %2769 = vrcp.f32 %v762_v13 }
 0x349   :  { %2771 = vrcp.f32 %v756_v16 }
 0x352   :  { %v2770_v34 = vpop.eup %2769 }
 0x353   :  { %v2772_v36 = vpop.eup %2771  ;;  %v772_v49 = vmul.f32 %v2770_v34, %v3164_v38 }
 0x358   :  { %v744_v21 = vpop.f32.mrb[6].mxu1 }
 0x359   :  { %v751_v23 = vadd.f32 %v744_v21, %v605_v19  ;;  %v746_v28 = vpop.f32.mrb[7].mxu1 }
 0x35a   :  { %v752_v51 = vadd.f32 %v746_v28, %v606_v20 }
 0x35b   :  { %2773 = vtanh.f32 %v751_v23 }
 0x35c   :  { %v2141_v29 = vmul.f32 -1.442695, %v752_v51  ;;  %v850_v51 = vld [vmem:[#allocation3 + $0x70] sm:$0xff] }
 0x35e   :  { %2775 = vpow2.f32 %v2141_v29  ;;  %v851_v29 = vld [vmem:[#allocation3 + $0x78] sm:$0xff] }
 0x365   :  { %v2774_v43 = vpop.eup %2773 }
 0x366   :  { %v773_v50 = vmul.f32 %v2774_v43, %v2772_v36 }
 0x368   :  { %v2776_v53 = vpop.eup %2775  ;;  %v3209_v35 = vadd.f32 %v773_v50, %v772_v49 }
 0x369   :  { %v769_v54 = vadd.f32 1.0, %v2776_v53 }
 0x36a   :  { %2777 = vtanh.f32 %v3209_v35 }
 0x36b   :  { %2779 = vrcp.f32 %v769_v54 }
 0x374   :  { %v2778_v56 = vpop.eup %2777 }
 0x375   :  { %v2780_v57 = vpop.eup %2779 }
 0x376   :  { %v776_v59 = vmul.f32 %v2780_v57, %v2778_v56 }
 0x378   :  { %2185 = vmatpush3.xpose.msra.mxu0 %v776_v59  ;;  %917 = vmatmul.mubr.f32.vlgmr.msra.gmra.mrb[8].mxu1 %v776_v59 }
 0x379   :  { %2439 = vmatprep.subr.bf16.mxu0 %v3009_v22  ;;  %2191 = vmatprep.mubr.msk.f32.mxu1 %vm2943_vm0, %v2942_v0 }
 0x37b   :  { %2187 = vmatmul.mubr.f32.vlgmr.msra.gmra.mrb[8].mxu0 %v3121_v44 }
 0x37c   :  { %2441 = vmatpush1.bf16.msra.mxu0 %v3011_v25  ;;  %987 = vmatprep.mubr.f32.mxu0 %v2942_v0 }
 0x37d   :  { %2443 = vmatprep.subr.bf16.mxu0 %v3021_v33 }
 0x380   :  { %2445 = vmatpush1.bf16.msra.mxu0 %v3023_v37 }
 0x381   :  { %2447 = vmatprep.subr.bf16.mxu0 %v3029_v45 }
 0x384   :  { %2449 = vmatpush1.bf16.msra.mxu0 %v3035_v48 }
 0x385   :  { %2451 = vmatprep.subr.bf16.mxu0 %v3038_v52 }
 0x388   :  { %2453 = vmatpush1.bf16.msra.mxu0 %v3047_v62 }
 0x389   :  { %2455 = vmatprep.subr.bf16.mxu0 %v3050_v1 }
 0x38c   :  { %2457 = vmatpush1.bf16.msra.mxu0 %v3059_v15 }
 0x38d   :  { %2459 = vmatprep.subr.bf16.mxu0 %v3062_v18 }
 0x390   :  { %2461 = vmatpush1.bf16.msra.mxu0 %v3071_v31 }
 0x391   :  { %2463 = vmatprep.subr.bf16.mxu0 %v3074_v32 }
 0x394   :  { %2465 = vmatpush1.bf16.msra.mxu0 %v3081_v40 }
 0x395   :  { %2467 = vmatprep.subr.bf16.mxu0 %v3084_v41 }
 0x398   :  { %2469 = vmatpush1.bf16.msra.mxu0 %v3088_v47 }
 0x399   :  { %2471 = vmatprep.subr.bf16.mxu0 %v2996_v4 }
 0x39b   :  { %988 = vmatmul.mubr.f32.vlgmr.msra.gmra.mrb[10].mxu0 %v776_v59 }
 0x39c   :  { %2473 = vmatpush1.bf16.msra.mxu0 %v2998_v8  ;;  %1161 = vmatprep.mubr.f32.mxu0 %v2942_v0 }
 0x39d   :  { %2475 = vmatprep.subr.bf16.mxu0 %v3000_v9 }
 0x3a0   :  { %2477 = vmatpush1.bf16.msra.mxu0 %v3004_v14 }
 0x3a1   :  { %2479 = vmatprep.subr.bf16.mxu0 %v3007_v17 }
 0x3a4   :  { %2481 = vmatpush1.bf16.msra.mxu0 %v3014_v26 }
 0x3a5   :  { %2483 = vmatprep.subr.bf16.mxu0 %v3018_v30 }
 0x3a8   :  { %2485 = vmatpush1.bf16.msra.mxu0 %v3027_v42 }
 0x3a9   :  { %2487 = vmatprep.subr.bf16.mxu0 %v3032_v46 }
 0x3ac   :  { %2489 = vmatpush1.bf16.msra.mxu0 %v3041_v55 }
 0x3ad   :  { %2491 = vmatprep.subr.bf16.mxu0 %v3044_v58 }
 0x3b0   :  { %2493 = vmatpush1.bf16.msra.mxu0 %v3053_v7 }
 0x3b1   :  { %2495 = vmatprep.subr.bf16.mxu0 %v3056_v10 }
 0x3b4   :  { %2497 = vmatpush1.bf16.msra.mxu0 %v3065_v24 }
 0x3b5   :  { %2499 = vmatprep.subr.bf16.mxu0 %v3068_v27 }
 0x3b8   :  { %2501 = vmatpush1.bf16.msra.mxu0 %v3077_v39 }
 0x3b9   :  { %2194 = vmatprep.subr.mxu0 %v2942_v0 }
 0x44b   :  { %v918_v38 = vpop.f32.mrb[8].mxu1 }
 0x44c   :  { %v920_v61 = vpop.f32.mrb[9].mxu1  ;;  %v994_v13 = vadd.f32 %v918_v38, %v848_v11 }
 0x44d   :  { %v995_v12 = vadd.f32 %v920_v61, %v849_v6 }
 0x44e   :  { %v843_v63 = vpop.f32.mrb[8].mxu0  ;;  %v2142_v19 = vmul.f32 -1.442695, %v994_v13 }
 0x44f   :  { %v2076_v2 = vrot.slane %v843_v63, 6  ;;  %v2188_v3 = vpop.f32.mrb[9].mxu0  ;;  %v2143_v16 = vmul.f32 -1.442695, %v995_v12 }
 0x451   :  { %v3251_v5 = vsel %vm2095_vm2, %v3206_v60, %v2076_v2  ;;  %2781 = vpow2.f32 %v2143_v16 }
 0x452   :  { %2783 = vpow2.f32 %v2142_v19  ;;  %v1094_v19 = vld [vmem:[#allocation3 + $0x88] sm:$0xff] }
 0x45b   :  { %v2782_v20 = vpop.eup %2781 }
 0x45c   :  { %v2784_v21 = vpop.eup %2783  ;;  %v1007_v23 = vadd.f32 1.0, %v2782_v20  ;;  %v1093_v20 = vld [vmem:[#allocation3 + $0x80] sm:$0xff] }
 0x45d   :  { %v1001_v28 = vadd.f32 1.0, %v2784_v21 }
 0x45e   :  { %2785 = vrcp.f32 %v1007_v23 }
 0x45f   :  { %2787 = vrcp.f32 %v1001_v28 }
 0x468   :  { %v2786_v50 = vpop.eup %2785 }
 0x469   :  { %v2788_v53 = vpop.eup %2787  ;;  %v1017_v56 = vmul.f32 %v2786_v50, %v3209_v35 }
 0x46e   :  { %v989_v34 = vpop.f32.mrb[10].mxu0 }
 0x46f   :  { %v996_v36 = vadd.f32 %v989_v34, %v850_v51  ;;  %v991_v43 = vpop.f32.mrb[11].mxu0 }
 0x470   :  { %v997_v60 = vadd.f32 %v991_v43, %v851_v29 }
 0x471   :  { %2789 = vtanh.f32 %v996_v36 }
 0x472   :  { %v2144_v49 = vmul.f32 -1.442695, %v997_v60  ;;  %v1095_v60 = vld [vmem:[#allocation3 + $0x90] sm:$0xff] }
 0x474   :  { %2791 = vpow2.f32 %v2144_v49  ;;  %v1096_v49 = vld [vmem:[#allocation3 + $0x98] sm:$0xff] }
 0x47b   :  { %v2790_v54 = vpop.eup %2789 }
 0x47c   :  { %v1018_v57 = vmul.f32 %v2790_v54, %v2788_v53 }
 0x47e   :  { %v2792_v59 = vpop.eup %2791  ;;  %v3254_v38 = vadd.f32 %v1018_v57, %v1017_v56 }
 0x47f   :  { %v1014_v61 = vadd.f32 1.0, %v2792_v59 }
 0x480   :  { %2793 = vtanh.f32 %v3254_v38 }
 0x481   :  { %2795 = vrcp.f32 %v1014_v61 }
 0x48a   :  { %v2794_v63 = vpop.eup %2793 }
 0x48b   :  { %v2796_v2 = vpop.eup %2795 }
 0x48c   :  { %v1021_v3 = vmul.f32 %v2796_v2, %v2794_v63 }
 0x48e   :  { %2190 = vmatpush3.xpose.msra.mxu1 %v1021_v3  ;;  %1162 = vmatmul.mubr.f32.vlgmr.msra.gmra.mrb[12].mxu0 %v1021_v3 }
 0x48f   :  { %2503 = vmatprep.subr.bf16.mxu1 %v3009_v22  ;;  %2196 = vmatprep.mubr.msk.f32.mxu0 %vm2943_vm0, %v2942_v0 }
 0x491   :  { %2192 = vmatmul.mubr.f32.vlgmr.msra.gmra.mrb[10].mxu1 %v3121_v44 }
 0x492   :  { %2505 = vmatpush1.bf16.msra.mxu1 %v3011_v25  ;;  %1232 = vmatprep.mubr.f32.mxu1 %v2942_v0 }
 0x493   :  { %2507 = vmatprep.subr.bf16.mxu1 %v3021_v33 }
 0x496   :  { %2509 = vmatpush1.bf16.msra.mxu1 %v3023_v37 }
 0x497   :  { %2511 = vmatprep.subr.bf16.mxu1 %v3029_v45 }
 0x49a   :  { %2513 = vmatpush1.bf16.msra.mxu1 %v3035_v48 }
 0x49b   :  { %2515 = vmatprep.subr.bf16.mxu1 %v3038_v52 }
 0x49e   :  { %2517 = vmatpush1.bf16.msra.mxu1 %v3047_v62 }
 0x49f   :  { %2519 = vmatprep.subr.bf16.mxu1 %v3050_v1 }
 0x4a2   :  { %2521 = vmatpush1.bf16.msra.mxu1 %v3059_v15 }
 0x4a3   :  { %2523 = vmatprep.subr.bf16.mxu1 %v3062_v18 }
 0x4a6   :  { %2525 = vmatpush1.bf16.msra.mxu1 %v3071_v31 }
 0x4a7   :  { %2527 = vmatprep.subr.bf16.mxu1 %v3074_v32 }
 0x4aa   :  { %2529 = vmatpush1.bf16.msra.mxu1 %v3081_v40 }
 0x4ab   :  { %2531 = vmatprep.subr.bf16.mxu1 %v3084_v41 }
 0x4ae   :  { %2533 = vmatpush1.bf16.msra.mxu1 %v3088_v47 }
 0x4af   :  { %2535 = vmatprep.subr.bf16.mxu1 %v2996_v4 }
 0x4b1   :  { %1233 = vmatmul.mubr.f32.vlgmr.msra.gmra.mrb[12].mxu1 %v1021_v3 }
 0x4b2   :  { %2537 = vmatpush1.bf16.msra.mxu1 %v2998_v8  ;;  %1406 = vmatprep.mubr.f32.mxu1 %v2942_v0 }
 0x4b3   :  { %2539 = vmatprep.subr.bf16.mxu1 %v3000_v9 }
 0x4b6   :  { %2541 = vmatpush1.bf16.msra.mxu1 %v3004_v14 }
 0x4b7   :  { %2543 = vmatprep.subr.bf16.mxu1 %v3007_v17 }
 0x4ba   :  { %2545 = vmatpush1.bf16.msra.mxu1 %v3014_v26 }
 0x4bb   :  { %2547 = vmatprep.subr.bf16.mxu1 %v3018_v30 }
 0x4be   :  { %2549 = vmatpush1.bf16.msra.mxu1 %v3027_v42 }
 0x4bf   :  { %2551 = vmatprep.subr.bf16.mxu1 %v3032_v46 }
 0x4c2   :  { %2553 = vmatpush1.bf16.msra.mxu1 %v3041_v55 }
 0x4c3   :  { %2555 = vmatprep.subr.bf16.mxu1 %v3044_v58 }
 0x4c6   :  { %2557 = vmatpush1.bf16.msra.mxu1 %v3053_v7 }
 0x4c7   :  { %2559 = vmatprep.subr.bf16.mxu1 %v3056_v10 }
 0x4ca   :  { %2561 = vmatpush1.bf16.msra.mxu1 %v3065_v24 }
 0x4cb   :  { %2563 = vmatprep.subr.bf16.mxu1 %v3068_v27 }
 0x4ce   :  { %2565 = vmatpush1.bf16.msra.mxu1 %v3077_v39 }
 0x4cf   :  { %2199 = vmatprep.subr.mxu1 %v2942_v0 }
 0x561   :  { %v1163_v35 = vpop.f32.mrb[12].mxu0 }
 0x562   :  { %v1165_v6 = vpop.f32.mrb[13].mxu0  ;;  %v1239_v23 = vadd.f32 %v1163_v35, %v1093_v20 }
 0x563   :  { %v1240_v21 = vadd.f32 %v1165_v6, %v1094_v19 }
 0x564   :  { %v1088_v11 = vpop.f32.mrb[10].mxu1  ;;  %v2145_v51 = vmul.f32 -1.442695, %v1239_v23 }
 0x565   :  { %v2079_v12 = vrot.slane %v1088_v11, 5  ;;  %v2193_v13 = vpop.f32.mrb[11].mxu1  ;;  %v2146_v28 = vmul.f32 -1.442695, %v1240_v21 }
 0x567   :  { %v3296_v16 = vsel %vm2097_vm3, %v3251_v5, %v2079_v12  ;;  %2797 = vpow2.f32 %v2146_v28 }
 0x568   :  { %2799 = vpow2.f32 %v2145_v51  ;;  %v1339_v51 = vld [vmem:[#allocation3 + $0xa8] sm:$0xff] }
 0x571   :  { %v2798_v29 = vpop.eup %2797 }
 0x572   :  { %v2800_v34 = vpop.eup %2799  ;;  %v1252_v36 = vadd.f32 1.0, %v2798_v29  ;;  %v1338_v29 = vld [vmem:[#allocation3 + $0xa0] sm:$0xff] }
 0x573   :  { %v1246_v43 = vadd.f32 1.0, %v2800_v34 }
 0x574   :  { %2801 = vrcp.f32 %v1252_v36 }
 0x575   :  { %2803 = vrcp.f32 %v1246_v43 }
 0x57e   :  { %v2802_v57 = vpop.eup %2801 }
 0x57f   :  { %v2804_v59 = vpop.eup %2803  ;;  %v1262_v63 = vmul.f32 %v2802_v57, %v3254_v38 }
 0x584   :  { %v1234_v50 = vpop.f32.mrb[12].mxu1 }
 0x585   :  { %v1241_v53 = vadd.f32 %v1234_v50, %v1095_v60  ;;  %v1236_v54 = vpop.f32.mrb[13].mxu1 }
 0x586   :  { %v1242_v5 = vadd.f32 %v1236_v54, %v1096_v49 }
 0x587   :  { %2805 = vtanh.f32 %v1241_v53 }
 0x588   :  { %v2147_v56 = vmul.f32 -1.442695, %v1242_v5  ;;  %v1340_v5 = vld [vmem:[#allocation3 + $0xb0] sm:$0xff] }
 0x58a   :  { %2807 = vpow2.f32 %v2147_v56  ;;  %v1341_v56 = vld [vmem:[#allocation3 + $0xb8] sm:$0xff] }
 0x591   :  { %v2806_v61 = vpop.eup %2805 }
 0x592   :  { %v1263_v2 = vmul.f32 %v2806_v61, %v2804_v59 }
 0x594   :  { %v2808_v3 = vpop.eup %2807  ;;  %v3299_v35 = vadd.f32 %v1263_v2, %v1262_v63 }
 0x595   :  { %v1259_v6 = vadd.f32 1.0, %v2808_v3 }
 0x596   :  { %2809 = vtanh.f32 %v3299_v35 }
 0x597   :  { %2811 = vrcp.f32 %v1259_v6 }
 0x5a0   :  { %v2810_v11 = vpop.eup %2809 }
 0x5a1   :  { %v2812_v12 = vpop.eup %2811 }
 0x5a2   :  { %v1266_v13 = vmul.f32 %v2812_v12, %v2810_v11 }
 0x5a4   :  { %2195 = vmatpush3.xpose.msra.mxu0 %v1266_v13  ;;  %1407 = vmatmul.mubr.f32.vlgmr.msra.gmra.mrb[14].mxu1 %v1266_v13 }
 0x5a5   :  { %2567 = vmatprep.subr.bf16.mxu0 %v3009_v22  ;;  %2201 = vmatprep.mubr.msk.f32.mxu1 %vm2943_vm0, %v2942_v0 }
 0x5a7   :  { %2197 = vmatmul.mubr.f32.vlgmr.msra.gmra.mrb[14].mxu0 %v3121_v44 }
 0x5a8   :  { %2569 = vmatpush1.bf16.msra.mxu0 %v3011_v25  ;;  %1477 = vmatprep.mubr.f32.mxu0 %v2942_v0 }
 0x5a9   :  { %2571 = vmatprep.subr.bf16.mxu0 %v3021_v33 }
 0x5ac   :  { %2573 = vmatpush1.bf16.msra.mxu0 %v3023_v37 }
 0x5ad   :  { %2575 = vmatprep.subr.bf16.mxu0 %v3029_v45 }
 0x5b0   :  { %2577 = vmatpush1.bf16.msra.mxu0 %v3035_v48 }
 0x5b1   :  { %2579 = vmatprep.subr.bf16.mxu0 %v3038_v52 }
 0x5b4   :  { %2581 = vmatpush1.bf16.msra.mxu0 %v3047_v62 }
 0x5b5   :  { %2583 = vmatprep.subr.bf16.mxu0 %v3050_v1 }
 0x5b8   :  { %2585 = vmatpush1.bf16.msra.mxu0 %v3059_v15 }
 0x5b9   :  { %2587 = vmatprep.subr.bf16.mxu0 %v3062_v18 }
 0x5bc   :  { %2589 = vmatpush1.bf16.msra.mxu0 %v3071_v31 }
 0x5bd   :  { %2591 = vmatprep.subr.bf16.mxu0 %v3074_v32 }
 0x5c0   :  { %2593 = vmatpush1.bf16.msra.mxu0 %v3081_v40 }
 0x5c1   :  { %2595 = vmatprep.subr.bf16.mxu0 %v3084_v41 }
 0x5c4   :  { %2597 = vmatpush1.bf16.msra.mxu0 %v3088_v47 }
 0x5c5   :  { %2599 = vmatprep.subr.bf16.mxu0 %v2996_v4 }
 0x5c7   :  { %1478 = vmatmul.mubr.f32.vlgmr.msra.gmra.mrb[16].mxu0 %v1266_v13 }
 0x5c8   :  { %2601 = vmatpush1.bf16.msra.mxu0 %v2998_v8  ;;  %1651 = vmatprep.mubr.f32.mxu0 %v2942_v0 }
 0x5c9   :  { %2603 = vmatprep.subr.bf16.mxu0 %v3000_v9 }
 0x5cc   :  { %2605 = vmatpush1.bf16.msra.mxu0 %v3004_v14 }
 0x5cd   :  { %2607 = vmatprep.subr.bf16.mxu0 %v3007_v17 }
 0x5d0   :  { %2609 = vmatpush1.bf16.msra.mxu0 %v3014_v26 }
 0x5d1   :  { %2611 = vmatprep.subr.bf16.mxu0 %v3018_v30 }
 0x5d4   :  { %2613 = vmatpush1.bf16.msra.mxu0 %v3027_v42 }
 0x5d5   :  { %2615 = vmatprep.subr.bf16.mxu0 %v3032_v46 }
 0x5d8   :  { %2617 = vmatpush1.bf16.msra.mxu0 %v3041_v55 }
 0x5d9   :  { %2619 = vmatprep.subr.bf16.mxu0 %v3044_v58 }
 0x5dc   :  { %2621 = vmatpush1.bf16.msra.mxu0 %v3053_v7 }
 0x5dd   :  { %2623 = vmatprep.subr.bf16.mxu0 %v3056_v10 }
 0x5e0   :  { %2625 = vmatpush1.bf16.msra.mxu0 %v3065_v24 }
 0x5e1   :  { %2627 = vmatprep.subr.bf16.mxu0 %v3068_v27 }
 0x5e4   :  { %2629 = vmatpush1.bf16.msra.mxu0 %v3077_v39 }
 0x5e5   :  { %2204 = vmatprep.subr.mxu0 %v2942_v0 }
 0x677   :  { %v1408_v38 = vpop.f32.mrb[14].mxu1 }
 0x678   :  { %v1410_v19 = vpop.f32.mrb[15].mxu1  ;;  %v1484_v36 = vadd.f32 %v1408_v38, %v1338_v29 }
 0x679   :  { %v1485_v34 = vadd.f32 %v1410_v19, %v1339_v51  ;;  %v1586_v51 = vld [vmem:[#allocation3 + $0xd8] sm:$0xff] }
 0x67a   :  { %v1333_v20 = vpop.f32.mrb[14].mxu0  ;;  %v2148_v60 = vmul.f32 -1.442695, %v1484_v36 }
 0x67b   :  { %v2082_v21 = vrot.slane %v1333_v20, 4  ;;  %v2198_v23 = vpop.f32.mrb[15].mxu0  ;;  %v2149_v43 = vmul.f32 -1.442695, %v1485_v34 }
 0x67d   :  { %v3341_v28 = vsel %vm2099_vm4, %v3296_v16, %v2082_v21  ;;  %2813 = vpow2.f32 %v2149_v43 }
 0x67e   :  { %2815 = vpow2.f32 %v2148_v60 }
 0x687   :  { %v2814_v49 = vpop.eup %2813 }
 0x688   :  { %v2816_v50 = vpop.eup %2815  ;;  %v1497_v53 = vadd.f32 1.0, %v2814_v49 }
 0x689   :  { %v1491_v54 = vadd.f32 1.0, %v2816_v50 }
 0x68a   :  { %2817 = vrcp.f32 %v1497_v53 }
 0x68b   :  { %2819 = vrcp.f32 %v1491_v54 }
 0x694   :  { %v2818_v2 = vpop.eup %2817 }
 0x695   :  { %v2820_v3 = vpop.eup %2819  ;;  %v1507_v11 = vmul.f32 %v2818_v2, %v3299_v35  ;;  %v1585_v35 = vld [vmem:[#allocation3 + $0xd0] sm:$0xff] }
 0x69a   :  { %v1479_v57 = vpop.f32.mrb[16].mxu0 }
 0x69b   :  { %v1486_v59 = vadd.f32 %v1479_v57, %v1340_v5  ;;  %v1481_v61 = vpop.f32.mrb[17].mxu0 }
 0x69c   :  { %v1487_v16 = vadd.f32 %v1481_v61, %v1341_v56 }
 0x69d   :  { %2821 = vtanh.f32 %v1486_v59 }
 0x69e   :  { %v2150_v63 = vmul.f32 -1.442695, %v1487_v16 }
 0x6a0   :  { %2823 = vpow2.f32 %v2150_v63 }
 0x6a7   :  { %v2822_v6 = vpop.eup %2821 }
 0x6a8   :  { %v1508_v12 = vmul.f32 %v2822_v6, %v2820_v3 }
 0x6aa   :  { %v2824_v13 = vpop.eup %2823  ;;  %v3344_v38 = vadd.f32 %v1508_v12, %v1507_v11 }
 0x6ab   :  { %v1504_v19 = vadd.f32 1.0, %v2824_v13 }
 0x6ac   :  { %2825 = vtanh.f32 %v3344_v38 }
 0x6ad   :  { %2827 = vrcp.f32 %v1504_v19 }
 0x6b6   :  { %v2826_v20 = vpop.eup %2825 }
 0x6b7   :  { %v2828_v21 = vpop.eup %2827 }
 0x6b8   :  { %v1511_v23 = vmul.f32 %v2828_v21, %v2826_v20 }
 0x6ba   :  { %2200 = vmatpush3.xpose.msra.mxu1 %v1511_v23  ;;  %1652 = vmatmul.mubr.f32.vlgmr.msra.gmra.mrb[18].mxu0 %v1511_v23 }
 0x6bb   :  { %2631 = vmatprep.subr.bf16.mxu1 %v3009_v22  ;;  %2206 = vmatprep.mubr.msk.f32.mxu0 %vm2943_vm0, %v2942_v0 }
 0x6bd   :  { %2202 = vmatmul.mubr.f32.vlgmr.msra.gmra.mrb[16].mxu1 %v3121_v44 }
 0x6be   :  { %2633 = vmatpush1.bf16.msra.mxu1 %v3011_v25  ;;  %1722 = vmatprep.mubr.f32.mxu1 %v2942_v0 }
 0x6bf   :  { %2635 = vmatprep.subr.bf16.mxu1 %v3021_v33 }
 0x6c2   :  { %2637 = vmatpush1.bf16.msra.mxu1 %v3023_v37 }
 0x6c3   :  { %2639 = vmatprep.subr.bf16.mxu1 %v3029_v45 }
 0x6c6   :  { %2641 = vmatpush1.bf16.msra.mxu1 %v3035_v48 }
 0x6c7   :  { %2643 = vmatprep.subr.bf16.mxu1 %v3038_v52 }
 0x6ca   :  { %2645 = vmatpush1.bf16.msra.mxu1 %v3047_v62 }
 0x6cb   :  { %2647 = vmatprep.subr.bf16.mxu1 %v3050_v1 }
 0x6ce   :  { %2649 = vmatpush1.bf16.msra.mxu1 %v3059_v15 }
 0x6cf   :  { %2651 = vmatprep.subr.bf16.mxu1 %v3062_v18 }
 0x6d2   :  { %2653 = vmatpush1.bf16.msra.mxu1 %v3071_v31 }
 0x6d3   :  { %2655 = vmatprep.subr.bf16.mxu1 %v3074_v32 }
 0x6d6   :  { %2657 = vmatpush1.bf16.msra.mxu1 %v3081_v40 }
 0x6d7   :  { %2659 = vmatprep.subr.bf16.mxu1 %v3084_v41 }
 0x6da   :  { %2661 = vmatpush1.bf16.msra.mxu1 %v3088_v47 }
 0x6db   :  { %2663 = vmatprep.subr.bf16.mxu1 %v2996_v4 }
 0x6dd   :  { %1723 = vmatmul.mubr.f32.vlgmr.msra.gmra.mrb[18].mxu1 %v1511_v23 }
 0x6de   :  { %2665 = vmatpush1.bf16.msra.mxu1 %v2998_v8  ;;  %1896 = vmatprep.mubr.f32.mxu1 %v2942_v0 }
 0x6df   :  { %2667 = vmatprep.subr.bf16.mxu1 %v3000_v9 }
 0x6e2   :  { %2669 = vmatpush1.bf16.msra.mxu1 %v3004_v14 }
 0x6e3   :  { %2671 = vmatprep.subr.bf16.mxu1 %v3007_v17 }
 0x6e6   :  { %2673 = vmatpush1.bf16.msra.mxu1 %v3014_v26 }
 0x6e7   :  { %2675 = vmatprep.subr.bf16.mxu1 %v3018_v30  ;;  %v1584_v30 = vld [vmem:[#allocation3 + $0xc8] sm:$0xff] }
 0x6ea   :  { %2677 = vmatpush1.bf16.msra.mxu1 %v3027_v42  ;;  %v1583_v42 = vld [vmem:[#allocation3 + $0xc0] sm:$0xff] }
 0x6eb   :  { %2679 = vmatprep.subr.bf16.mxu1 %v3032_v46 }
 0x6ee   :  { %2681 = vmatpush1.bf16.msra.mxu1 %v3041_v55 }
 0x6ef   :  { %2683 = vmatprep.subr.bf16.mxu1 %v3044_v58 }
 0x6f2   :  { %2685 = vmatpush1.bf16.msra.mxu1 %v3053_v7 }
 0x6f3   :  { %2687 = vmatprep.subr.bf16.mxu1 %v3056_v10 }
 0x6f6   :  { %2689 = vmatpush1.bf16.msra.mxu1 %v3065_v24 }
 0x6f7   :  { %2691 = vmatprep.subr.bf16.mxu1 %v3068_v27 }
 0x6fa   :  { %2693 = vmatpush1.bf16.msra.mxu1 %v3077_v39 }
 0x6fb   :  { %2209 = vmatprep.subr.mxu1 %v2942_v0 }
 0x78d   :  { %v1653_v4 = vpop.f32.mrb[18].mxu0 }
 0x78e   :  { %v1655_v8 = vpop.f32.mrb[19].mxu0  ;;  %v1729_v55 = vadd.f32 %v1653_v4, %v1583_v42  ;;  %v2107_v42 = vstv %s3431_s3 }
 0x78f   :  { %v1730_v46 = vadd.f32 %v1655_v8, %v1584_v30 }
 0x790   :  { %v1578_v9 = vpop.f32.mrb[16].mxu1  ;;  %v2151_v7 = vmul.f32 -1.442695, %v1729_v55 }
 0x791   :  { %v2085_v14 = vrot.slane %v1578_v9, 3  ;;  %v2203_v17 = vpop.f32.mrb[17].mxu1  ;;  %v2152_v58 = vmul.f32 -1.442695, %v1730_v46 }
 0x792   :  { %v2865_v17 = vld [vmem:[%s3430_s2] sm:$0x1]  ;;  %s2910_s2 = scalar_lea.vmem %s2124_s20, 128 }
 0x793   :  { %v3386_v26 = vsel %vm2101_vm5, %v3341_v28, %v2085_v14  ;;  %2829 = vpow2.f32 %v2152_v58  ;;  %p2911_p2 = scmp.ne.s32.totalorder %s2124_s20, %s2910_s2  ;;  %p2916_p4 = scmp.lt.s32.totalorder %s2910_s2, %s2910_s2 }
 0x794   :  { %2831 = vpow2.f32 %v2151_v7 }
 0x795   :  { %p2917_p5 = por %p2916_p4, %p2915_p3 }
 0x797   :  { %p2918_p6 = pnand %p2917_p5, %p2911_p2 }
 0x79d   :  { %v2830_v10 = vpop.eup %2829 }
 0x79e   :  { %v2832_v24 = vpop.eup %2831  ;;  %v1742_v27 = vadd.f32 1.0, %v2830_v10 }
 0x79f   :  { %v1736_v39 = vadd.f32 1.0, %v2832_v24 }
 0x7a0   :  { %2833 = vrcp.f32 %v1742_v27 }
 0x7a1   :  { %2835 = vrcp.f32 %v1736_v39 }
 0x7aa   :  { %v2834_v60 = vpop.eup %2833 }
 0x7ab   :  { %v2836_v49 = vpop.eup %2835  ;;  %v1752_v53 = vmul.f32 %v2834_v60, %v3344_v38 }
 0x7b0   :  { %v1724_v29 = vpop.f32.mrb[18].mxu1 }
 0x7b1   :  { %v1731_v34 = vadd.f32 %v1724_v29, %v1585_v35  ;;  %v1726_v36 = vpop.f32.mrb[19].mxu1 }
 0x7b2   :  { %v1732_v28 = vadd.f32 %v1726_v36, %v1586_v51 }
 0x7b3   :  { %2837 = vtanh.f32 %v1731_v34 }
 0x7b4   :  { %v2153_v43 = vmul.f32 -1.442695, %v1732_v28 }
 0x7b6   :  { %2839 = vpow2.f32 %v2153_v43 }
 0x7bd   :  { %v2838_v50 = vpop.eup %2837 }
 0x7be   :  { %v1753_v54 = vmul.f32 %v2838_v50, %v2836_v49 }
 0x7c0   :  { %v2840_v5 = vpop.eup %2839  ;;  %v1754_v56 = vadd.f32 %v1753_v54, %v1752_v53 }
 0x7c1   :  { %v1749_v57 = vadd.f32 1.0, %v2840_v5 }
 0x7c2   :  { %2841 = vtanh.f32 %v1754_v56 }
 0x7c3   :  { %2843 = vrcp.f32 %v1749_v57 }
 0x7cc   :  { %v2842_v59 = vpop.eup %2841 }
 0x7cd   :  { %v2844_v61 = vpop.eup %2843 }
 0x7ce   :  { %v1756_v16 = vmul.f32 %v2844_v61, %v2842_v59 }
 0x7d0   :  { %2205 = vmatpush3.xpose.msra.mxu0 %v1756_v16  ;;  %1897 = vmatmul.mubr.f32.vlgmr.msra.gmra.mrb[20].mxu1 %v1756_v16 }
 0x7d1   :  { %2695 = vmatprep.subr.bf16.mxu0 %v3009_v22  ;;  %2211 = vmatprep.mubr.msk.f32.mxu1 %vm2943_vm0, %v2942_v0 }
 0x7d3   :  { %2207 = vmatmul.mubr.f32.vlgmr.msra.gmra.mrb[20].mxu0 %v3121_v44  ;;  %v1831_v44 = vld [vmem:[#allocation3 + $0xf8] sm:$0xff] }
 0x7d4   :  { %2697 = vmatpush1.bf16.msra.mxu0 %v3011_v25  ;;  %1967 = vmatprep.mubr.f32.mxu0 %v2942_v0 }
 0x7d5   :  { %2699 = vmatprep.subr.bf16.mxu0 %v3021_v33 }
 0x7d8   :  { %2701 = vmatpush1.bf16.msra.mxu0 %v3023_v37 }
 0x7d9   :  { %2703 = vmatprep.subr.bf16.mxu0 %v3029_v45 }
 0x7dc   :  { %2705 = vmatpush1.bf16.msra.mxu0 %v3035_v48  ;;  %v1829_v48 = vld [vmem:[#allocation3 + $0xe8] sm:$0xff] }
 0x7dd   :  { %2707 = vmatprep.subr.bf16.mxu0 %v3038_v52  ;;  %v1828_v52 = vld [vmem:[#allocation3 + $0xe0] sm:$0xff] }
 0x7e0   :  { %2709 = vmatpush1.bf16.msra.mxu0 %v3047_v62 }
 0x7e1   :  { %2711 = vmatprep.subr.bf16.mxu0 %v3050_v1 }
 0x7e4   :  { %2713 = vmatpush1.bf16.msra.mxu0 %v3059_v15 }
 0x7e5   :  { %2715 = vmatprep.subr.bf16.mxu0 %v3062_v18 }
 0x7e8   :  { %2717 = vmatpush1.bf16.msra.mxu0 %v3071_v31 }
 0x7e9   :  { %2719 = vmatprep.subr.bf16.mxu0 %v3074_v32 }
 0x7ec   :  { %2721 = vmatpush1.bf16.msra.mxu0 %v3081_v40 }
 0x7ed   :  { %2723 = vmatprep.subr.bf16.mxu0 %v3084_v41 }
 0x7f0   :  { %2725 = vmatpush1.bf16.msra.mxu0 %v3088_v47  ;;  %v1830_v47 = vld [vmem:[#allocation3 + $0xf0] sm:$0xff] }
 0x7f3   :  { %1968 = vmatmul.mubr.f32.vlgmr.msra.gmra.mrb[22].mxu0 %v1756_v16 }
 0x8a3   :  { %v1898_v0 = vpop.f32.mrb[20].mxu1 }
 0x8a4   :  { %v1900_v22 = vpop.f32.mrb[21].mxu1  ;;  %v1974_v1 = vadd.f32 %v1898_v0, %v1828_v52 }
 0x8a5   :  { %v1975_v62 = vadd.f32 %v1900_v22, %v1829_v48 }
 0x8a6   :  { %v1823_v25 = vpop.f32.mrb[20].mxu0  ;;  %v2154_v18 = vmul.f32 -1.442695, %v1974_v1 }
 0x8a7   :  { %v2088_v33 = vrot.slane %v1823_v25, 2  ;;  %v2208_v37 = vpop.f32.mrb[21].mxu0  ;;  %v2155_v15 = vmul.f32 -1.442695, %v1975_v62 }
 0x8a9   :  { %v2104_v45 = vsel %vm2103_vm6, %v3386_v26, %v2088_v33  ;;  %2845 = vpow2.f32 %v2155_v15 }
 0x8aa   :  { %2847 = vpow2.f32 %v2154_v18 }
 0x8b3   :  { %v2846_v31 = vpop.eup %2845 }
 0x8b4   :  { %v2848_v32 = vpop.eup %2847  ;;  %v1987_v40 = vadd.f32 1.0, %v2846_v31 }
 0x8b5   :  { %v1981_v41 = vadd.f32 1.0, %v2848_v32 }
 0x8b6   :  { %2849 = vrcp.f32 %v1987_v40 }
 0x8b7   :  { %2851 = vrcp.f32 %v1981_v41 }
 0x8c0   :  { %v2850_v12 = vpop.eup %2849 }
 0x8c1   :  { %v2852_v13 = vpop.eup %2851  ;;  %v1997_v19 = vmul.f32 %v2850_v12, %v1754_v56 }
 0x8c6   :  { %v1969_v63 = vpop.f32.mrb[22].mxu0 }
 0x8c7   :  { %v1976_v2 = vadd.f32 %v1969_v63, %v1830_v47  ;;  %v1971_v3 = vpop.f32.mrb[23].mxu0 }
 0x8c8   :  { %v1977_v6 = vadd.f32 %v1971_v3, %v1831_v44 }
 0x8c9   :  { %2853 = vtanh.f32 %v1976_v2 }
 0x8ca   :  { %v2156_v11 = vmul.f32 -1.442695, %v1977_v6 }
 0x8cc   :  { %2855 = vpow2.f32 %v2156_v11 }
 0x8d3   :  { %v2854_v38 = vpop.eup %2853 }
 0x8d4   :  { %v1998_v20 = vmul.f32 %v2854_v38, %v2852_v13 }
 0x8d6   :  { %v2856_v21 = vpop.eup %2855  ;;  %v1999_v23 = vadd.f32 %v1998_v20, %v1997_v19 }
 0x8d7   :  { %v1994_v4 = vadd.f32 1.0, %v2856_v21 }
 0x8d8   :  { %2857 = vtanh.f32 %v1999_v23 }
 0x8d9   :  { %2859 = vrcp.f32 %v1994_v4 }
 0x8e2   :  { %v2858_v8 = vpop.eup %2857 }
 0x8e3   :  { %v2860_v9 = vpop.eup %2859 }
 0x8e4   :  { %v2001_v14 = vmul.f32 %v2860_v9, %v2858_v8 }
 0x8e6   :  { %2210 = vmatpush3.xpose.msra.mxu1 %v2001_v14 }
 0x8e9   :  { %2212 = vmatmul.mubr.f32.vlgmr.msra.gmra.mrb[22].mxu1 %v2865_v17 }
 0x9bc   :  { %v2068_v26 = vpop.f32.mrb[22].mxu1 }
 0x9bd   :  { %v2091_v30 = vrot.slane %v2068_v26, 1  ;;  %v2213_v46 = vpop.f32.mrb[23].mxu1 }
 0x9bf   :  { %v2106_v55 = vsel %vm2105_vm7, %v2104_v45, %v2091_v30 }
 0x9c0   :  { %v2108_v58 = vadd.f32 %v2107_v42, %v2106_v55 }
 0x9c2   :  { %v2157_v7 = vmul.f32 -1.442695, %v2108_v58 }
 0x9c4   :  { %2861 = vpow2.f32 %v2157_v7 }
 0x9ce   :  { %v2862_v10 = vpop.eup %2861 }
 0x9cf   :  { %v2112_v24 = vadd.f32 1.0, %v2862_v10 }
 0x9d1   :  { %2863 = vrcp.f32 %v2112_v24 }
 0x9db   :  { %v2864_v27 = vpop.eup %2863 }
 0x9dc   :  { %2116 = vst.msk [vmem:[#allocation8] sm:$0xff] %vm2115_vm8, %v2864_v27 }
 0x9dd   :  { %2921 = shalt.err (!%p2918_p6)
}
 0x9de   :  { %s2922_s22 = scalar_lea.hbm %s3432_s4, 128 }
 0x9df   :  { %p2923_p7 = scmp.ne.s32.totalorder %s3432_s4, %s2922_s22  ;;  %p2926_p8 = scmp.lt.u32.totalorder %s2922_s22, %s3432_s4 }
 0x9e1   :  { %p2928_p9 = pnand %p2926_p8, %p2923_p7 }
 0x9e3   :  { %2931 = shalt.err (!%p2928_p9)
}
 0x9e4   :  { %2126 = dma.vmem_to_hbm [thread:$0]  %s2124_s20, 128, %s3432_s4, [#allocation5]  }
 0x9e5   :  { %2936 = dma.done.wait [#allocation5], 128  }
 0x9e6   :  { %2937 = vsyncadd [#allocation5], 4294967168 }
 0x9e7   :  { %2130 = vsyncpa [#allocation4], 1 }
 0x9e8   :  { %2131 = vsyncpa [#allocation7], 1 }
 0x9e9   :  { %2132 = vsyncpa [#allocation5], 1 }

</bundles_post_ra>
